<compile_context>
chip_gen: v5e
topology: v5e:2x2
jax: 0.10.0
libtpu: 0.0.40
codegen_flags: <defaults>
</compile_context>

<pallas_src>
import functools

import numpy as np
import jax
import jax.numpy as jnp
from jax.experimental import pallas as pl
from jax.experimental.pallas import tpu as pltpu


def _round_up(v, m):
    return (v + m - 1) // m * m


# ---------------------------------------------------------------------------
# Fused Pallas kernel: `bt` batch elements per grid step, everything VMEM resident
# ---------------------------------------------------------------------------
def _down_conv_block_kernel(x_ref, wsc_ref, wc_ref, wd_ref, bo_ref, bc_ref,
                            mask_ref, o_ref, taps_ref, newpad_ref, *,
                            k, wp, np_lane, cin, bt, stride, w_img, ho, op, d_off):
    """Fused Down_Conv_block.

    x_ref      : (bt, Cin, L)      zero-padded input, flattened row-major (width wp),
                                   lane axis zero-padded to L (multiple of 128)
    wsc/wc/wd  : (Co, k*k*Cin)     tap-packed conv weights (shortcut / conv / downscale)
    bo_ref     : (Cout, 1)         b_shortcut + b_downscale (both land on the output)
    bc_ref     : (Cin, 1)          b_conv (middle conv)
    mask_ref   : (1, bt*NP)        1.0 at valid dense positions (row-wrap cols zeroed)
    o_ref      : (bt, Cout, OP)    strided rows, dense columns (host finishes col stride)
    taps_ref   : (k*k*Cin, bt*NP)  VMEM scratch: tap-stacked MXU operand
    newpad_ref : (bt, Cin, L)      VMEM scratch: re-padded middle activation
    """
    kk = k * k

    def build_taps(src_ref):
        # k*k static lane-offset copies per batch element -> one big MXU operand.
        for b in range(bt):
            for dh in range(k):
                for dw in range(k):
                    t = dh * k + dw
                    off = dh * wp + dw
                    taps_ref[t * cin:(t + 1) * cin,
                             b * np_lane:(b + 1) * np_lane] = (
                        src_ref[b, :, off:off + np_lane])

    # --- conv #1 (shortcut, on X) and conv #2 (middle, on relu(X)) ----------------
    build_taps(x_ref)
    y_sc = jnp.dot(wsc_ref[...], taps_ref[...],
                   preferred_element_type=jnp.float32)          # (Cout, bt*NP)
    # relu commutes with the zero-padded tap gather (relu(0)==0): relu the operand.
    taps_ref[...] = jnp.maximum(taps_ref[...], 0.0)
    y_c = jnp.dot(wc_ref[...], taps_ref[...],
                  preferred_element_type=jnp.float32)           # (Cin, bt*NP)

    # --- bias + relu of middle conv, re-pad via mask-multiply + one offset store ---
    a = jnp.maximum(y_c + bc_ref[...], 0.0) * mask_ref[...]     # (Cin, bt*NP)
    newpad_ref[...] = jnp.zeros_like(newpad_ref)
    for b in range(bt):
        newpad_ref[b, :, d_off:d_off + np_lane] = a[:, b * np_lane:(b + 1) * np_lane]

    # --- conv #3 (downscale, on the re-padded middle activation) -------------------
    build_taps(newpad_ref)
    y_ds = jnp.dot(wd_ref[...], taps_ref[...],
                   preferred_element_type=jnp.float32)          # (Cout, bt*NP)

    # --- residual add + output biases, strided-ROW extraction ----------------------
    y = y_sc + y_ds + bo_ref[...]                               # (Cout, bt*NP)
    for b in range(bt):
        for oh in range(ho):
            src = b * np_lane + oh * stride * wp
            o_ref[b, :, oh * w_img:(oh + 1) * w_img] = (
                y[:, src:src + w_img].astype(o_ref.dtype))
        if op > ho * w_img:                                     # keep output defined
            o_ref[b, :, ho * w_img:op] = jnp.zeros(
                (y.shape[0], op - ho * w_img), o_ref.dtype)


# ---------------------------------------------------------------------------
# Host-side wrapper (layout glue only — no O((H*W)^2) constants anymore)
# ---------------------------------------------------------------------------
def _pack_conv_weight(w):
    # torch layout (Cout, Cin, kh, kw) -> (Cout, kh*kw*Cin), tap-major to match kernel
    co, ci, kh, kw = w.shape
    return jnp.transpose(w, (0, 2, 3, 1)).reshape(co, kh * kw * ci)


def down_conv_block_pallas(x, params, *, kernel_size=3, stride=2, batch_block=1):
    """x: (B, Cin, H, W) float32 (NCHW, as in the PyTorch module)."""
    B, Cin, H, W = x.shape
    k = kernel_size
    assert k % 2 == 1, "odd kernel_size expected for 'same'-style padding"
    assert B % batch_block == 0, "batch_block must divide batch"
    Bt = batch_block
    pad = k // 2
    Cout = params["w_sc"].shape[0]

    Hp, Wp = H + 2 * pad, W + 2 * pad
    Ho = (H + 2 * pad - k) // stride + 1
    Wo = (W + 2 * pad - k) // stride + 1
    n_full = H * Wp                          # dense stride-1 positions, flat (width Wp)
    NP = _round_up(n_full, 128)              # lane-padded dense width per batch elem
    max_off = (k - 1) * (Wp + 1)             # largest tap offset
    L = _round_up(NP + max_off, 128)         # flattened padded-image length (lanes)
    D = pad * (Wp + 1)                       # flat offset of (pad, pad) in padded image
    OP = _round_up(Ho * W, 128)              # lane-dense output block width
    KKC = k * k * Cin

    # tap slices stay in bounds; offset store stays in bounds; row slices stay in NP
    assert L >= Hp * Wp and D + NP <= L and (Ho - 1) * stride * Wp + W <= NP

    # layout glue: zero-pad spatially, flatten row-major (width Wp), lane-pad to L
    xp = jnp.pad(x, ((0, 0), (0, 0), (pad, pad), (pad, pad)))
    xflat = jnp.pad(xp.reshape(B, Cin, Hp * Wp), ((0, 0), (0, 0), (0, L - Hp * Wp)))

    wsc = _pack_conv_weight(params["w_sc"])
    wc = _pack_conv_weight(params["w_conv"])
    wd = _pack_conv_weight(params["w_ds"])
    bo = (params["b_sc"] + params["b_ds"]).reshape(Cout, 1)
    bc = params["b_conv"].reshape(Cin, 1)

    # (1, Bt*NP) validity mask: zero the row-wrap columns and the lane-padding tail
    p_idx = np.arange(NP)
    base_mask = ((p_idx < n_full) & ((p_idx % Wp) < W)).astype(np.float32)[None, :]
    mask = jnp.asarray(np.tile(base_mask, (1, Bt)))

    kern = functools.partial(_down_conv_block_kernel, k=k, wp=Wp, np_lane=NP,
                             cin=Cin, bt=Bt, stride=stride, w_img=W, ho=Ho,
                             op=OP, d_off=D)

    # VMEM budget derived from actual residency (double-buffered blocks + scratch)
    est_bytes = 4 * (2 * (Bt * Cin * L            # input block
                          + 2 * Cout * KKC + Cin * KKC + Cout + Cin   # weights/biases
                          + Bt * NP                # mask
                          + Bt * Cout * OP)        # output block
                     + KKC * Bt * NP               # tap scratch
                     + Bt * Cin * L)               # re-pad scratch
    vmem_limit = int(max(4 * est_bytes, 4 * 1024 * 1024))

    out = pl.pallas_call(
        kern,
        out_shape=jax.ShapeDtypeStruct((B, Cout, OP), jnp.float32),
        grid=(B // Bt,),
        in_specs=[
            pl.BlockSpec((Bt, Cin, L), lambda i: (i, 0, 0)),     # padded input image
            pl.BlockSpec((Cout, KKC), lambda i: (0, 0)),         # shortcut weight
            pl.BlockSpec((Cin, KKC), lambda i: (0, 0)),          # middle-conv weight
            pl.BlockSpec((Cout, KKC), lambda i: (0, 0)),         # downscale weight
            pl.BlockSpec((Cout, 1), lambda i: (0, 0)),           # b_sc + b_ds
            pl.BlockSpec((Cin, 1), lambda i: (0, 0)),            # b_conv
            pl.BlockSpec((1, Bt * NP), lambda i: (0, 0)),        # validity mask
        ],
        out_specs=pl.BlockSpec((Bt, Cout, OP), lambda i: (i, 0, 0)),
        scratch_shapes=[
            pltpu.VMEM((KKC, Bt * NP), jnp.float32),             # tap-stacked operand
            pltpu.VMEM((Bt, Cin, L), jnp.float32),               # re-padded activation
        ],
        compiler_params=pltpu.CompilerParams(
            dimension_semantics=("parallel",),                   # batch blocks -> TCs
            vmem_limit_bytes=vmem_limit,
        ),
    )(xflat, wsc, wc, wd, bo, bc, mask)

    # Kernel already selected the strided rows (lane-dense block); finish the cheap
    # stride-s column subsample on the host (tiny XLA slice, no quadratic constants).
    out = out[:, :, :Ho * W].reshape(B, Cout, Ho, W)
    return out[:, :, :, ::stride][:, :, :, :Wo]


# ---------------------------------------------------------------------------
# Pure-JAX reference (lax.conv) — validates the Pallas path
# ---------------------------------------------------------------------------
def down_conv_block_ref(x, params, *, kernel_size=3, stride=2):
    pad = kernel_size // 2
    dn = ("NCHW", "OIHW", "NCHW")

    def conv(xi, w, b, s):
        y = jax.lax.conv_general_dilated(
            xi, w, (s, s), [(pad, pad), (pad, pad)], dimension_numbers=dn,
            precision=jax.lax.Precision.HIGHEST)
        return y + b.reshape(1, -1, 1, 1)

    x_sc = conv(x, params["w_sc"], params["b_sc"], stride)
    h = jnp.maximum(x, 0.0)
    h = conv(h, params["w_conv"], params["b_conv"], 1)
    h = jnp.maximum(h, 0.0)
    h = conv(h, params["w_ds"], params["b_ds"], stride)
    return h + x_sc


# ---------------------------------------------------------------------------
if __name__ == "__main__":
    key = jax.random.PRNGKey(0)
    k_x, k_w1, k_b1, k_w2, k_b2, k_w3, k_b3 = jax.random.split(key, 7)

    B, Cin, H, W = 2, 4, 16, 16
    Cout, ksz, stride = 8, 3, 2

    def conv_init(kw, kb, co, ci, kk):
        fan_in = ci * kk * kk
        w = jax.random.normal(kw, (co, ci, kk, kk), jnp.float32) / np.sqrt(float(fan_in))
        b = 0.1 * jax.random.normal(kb, (co,), jnp.float32)
        return w, b

    w_sc, b_sc = conv_init(k_w1, k_b1, Cout, Cin, ksz)   # shortcut (strided)
    w_c, b_c = conv_init(k_w2, k_b2, Cin, Cin, ksz)      # conv (stride 1, 'same')
    w_d, b_d = conv_init(k_w3, k_b3, Cout, Cin, ksz)     # downscale (strided)
    params = dict(w_sc=w_sc, b_sc=b_sc, w_conv=w_c, b_conv=b_c, w_ds=w_d, b_ds=b_d)

    x = jax.random.normal(k_x, (B, Cin, H, W), jnp.float32)
    ref = down_conv_block_ref(x, params, kernel_size=ksz, stride=stride)

    # bt=1: grid=(2,) "parallel" (both v7x TCs);  bt=2: batch-blocked single step.
    for bt in (1, 2):
        fwd = jax.jit(functools.partial(down_conv_block_pallas,
                                        kernel_size=ksz, stride=stride,
                                        batch_block=bt))
        out = jax.block_until_ready(fwd(x, params))
        assert out.shape == (B, Cout, H // stride, W // stride), out.shape
        err = float(jnp.max(jnp.abs(out - ref)))
        assert err < 2e-3, (bt, err)

    print("KERNEL_OK")
</pallas_src>

<mosaic_0001>
module attributes {stable_mosaic.version = 11 : i64} {
  func.func @_down_conv_block_kernel(%arg0: i32, %arg1: memref<1x4x512xf32, #tpu.memory_space<vmem>>, %arg2: memref<8x36xf32, #tpu.memory_space<vmem>>, %arg3: memref<4x36xf32, #tpu.memory_space<vmem>>, %arg4: memref<8x36xf32, #tpu.memory_space<vmem>>, %arg5: memref<8x1xf32, #tpu.memory_space<vmem>>, %arg6: memref<4x1xf32, #tpu.memory_space<vmem>>, %arg7: memref<1x384xf32, #tpu.memory_space<vmem>>, %arg8: memref<1x8x128xf32, #tpu.memory_space<vmem>>, %arg9: memref<36x384xf32, #tpu.memory_space<vmem>>, %arg10: memref<1x4x512xf32, #tpu.memory_space<vmem>>) attributes {dimension_semantics = [#tpu.dimension_semantics<parallel>], iteration_bounds = array<i64: 2>, scalar_prefetch = 0 : i64, scratch_operands = 2 : i64, tpu.core_type = #tpu.core_type<tc>, window_params = [{transform_indices = @transform_0, window_bounds = array<i64: 1, 4, 512>}, {pipeline_mode = #tpu.pipeline_mode<synchronous>, transform_indices = @transform_1, window_bounds = array<i64: 8, 36>}, {pipeline_mode = #tpu.pipeline_mode<synchronous>, transform_indices = @transform_2, window_bounds = array<i64: 4, 36>}, {pipeline_mode = #tpu.pipeline_mode<synchronous>, transform_indices = @transform_3, window_bounds = array<i64: 8, 36>}, {pipeline_mode = #tpu.pipeline_mode<synchronous>, transform_indices = @transform_4, window_bounds = array<i64: 8, 1>}, {pipeline_mode = #tpu.pipeline_mode<synchronous>, transform_indices = @transform_5, window_bounds = array<i64: 4, 1>}, {pipeline_mode = #tpu.pipeline_mode<synchronous>, transform_indices = @transform_6, window_bounds = array<i64: 1, 384>}, {transform_indices = @transform_7, window_bounds = array<i64: 1, 8, 128>}]} {
    %c0 = arith.constant 0 : index
    %c0_0 = arith.constant 0 : index
    %c0_1 = arith.constant 0 : index
    %0 = vector.load %arg1[%c0, %c0_0, %c0_1] : memref<1x4x512xf32, #tpu.memory_space<vmem>>, vector<1x4x384xf32>
    %1 = vector.shape_cast %0 : vector<1x4x384xf32> to vector<4x384xf32>
    %c0_2 = arith.constant 0 : index
    %c0_3 = arith.constant 0 : index
    %2 = vector.load %arg9[%c0_2, %c0_3] : memref<36x384xf32, #tpu.memory_space<vmem>>, vector<4x384xf32>
    tpu.vector_store %arg9[%c0_2, %c0_3], %1 {strides = array<i32>} : memref<36x384xf32, #tpu.memory_space<vmem>>, vector<4x384xf32>,
    %c0_4 = arith.constant 0 : index
    %c0_5 = arith.constant 0 : index
    %c1 = arith.constant 1 : index
    %3 = vector.load %arg1[%c0_4, %c0_5, %c1] : memref<1x4x512xf32, #tpu.memory_space<vmem>>, vector<1x4x384xf32>
    %4 = vector.shape_cast %3 : vector<1x4x384xf32> to vector<4x384xf32>
    %c4 = arith.constant 4 : index
    %c0_6 = arith.constant 0 : index
    %5 = vector.load %arg9[%c4, %c0_6] : memref<36x384xf32, #tpu.memory_space<vmem>>, vector<4x384xf32>
    tpu.vector_store %arg9[%c4, %c0_6], %4 {strides = array<i32>} : memref<36x384xf32, #tpu.memory_space<vmem>>, vector<4x384xf32>,
    %c0_7 = arith.constant 0 : index
    %c0_8 = arith.constant 0 : index
    %c2 = arith.constant 2 : index
    %6 = vector.load %arg1[%c0_7, %c0_8, %c2] : memref<1x4x512xf32, #tpu.memory_space<vmem>>, vector<1x4x384xf32>
    %7 = vector.shape_cast %6 : vector<1x4x384xf32> to vector<4x384xf32>
    %c8 = arith.constant 8 : index
    %c0_9 = arith.constant 0 : index
    %8 = vector.load %arg9[%c8, %c0_9] : memref<36x384xf32, #tpu.memory_space<vmem>>, vector<4x384xf32>
    tpu.vector_store %arg9[%c8, %c0_9], %7 {strides = array<i32>} : memref<36x384xf32, #tpu.memory_space<vmem>>, vector<4x384xf32>,
    %c0_10 = arith.constant 0 : index
    %c0_11 = arith.constant 0 : index
    %c18 = arith.constant 18 : index
    %9 = vector.load %arg1[%c0_10, %c0_11, %c18] : memref<1x4x512xf32, #tpu.memory_space<vmem>>, vector<1x4x384xf32>
    %10 = vector.shape_cast %9 : vector<1x4x384xf32> to vector<4x384xf32>
    %c12 = arith.constant 12 : index
    %c0_12 = arith.constant 0 : index
    %11 = vector.load %arg9[%c12, %c0_12] : memref<36x384xf32, #tpu.memory_space<vmem>>, vector<4x384xf32>
    tpu.vector_store %arg9[%c12, %c0_12], %10 {strides = array<i32>} : memref<36x384xf32, #tpu.memory_space<vmem>>, vector<4x384xf32>,
    %c0_13 = arith.constant 0 : index
    %c0_14 = arith.constant 0 : index
    %c19 = arith.constant 19 : index
    %12 = vector.load %arg1[%c0_13, %c0_14, %c19] : memref<1x4x512xf32, #tpu.memory_space<vmem>>, vector<1x4x384xf32>
    %13 = vector.shape_cast %12 : vector<1x4x384xf32> to vector<4x384xf32>
    %c16 = arith.constant 16 : index
    %c0_15 = arith.constant 0 : index
    %14 = vector.load %arg9[%c16, %c0_15] : memref<36x384xf32, #tpu.memory_space<vmem>>, vector<4x384xf32>
    tpu.vector_store %arg9[%c16, %c0_15], %13 {strides = array<i32>} : memref<36x384xf32, #tpu.memory_space<vmem>>, vector<4x384xf32>,
    %c0_16 = arith.constant 0 : index
    %c0_17 = arith.constant 0 : index
    %c20 = arith.constant 20 : index
    %15 = vector.load %arg1[%c0_16, %c0_17, %c20] : memref<1x4x512xf32, #tpu.memory_space<vmem>>, vector<1x4x384xf32>
    %16 = vector.shape_cast %15 : vector<1x4x384xf32> to vector<4x384xf32>
    %c20_18 = arith.constant 20 : index
    %c0_19 = arith.constant 0 : index
    %17 = vector.load %arg9[%c20_18, %c0_19] : memref<36x384xf32, #tpu.memory_space<vmem>>, vector<4x384xf32>
    tpu.vector_store %arg9[%c20_18, %c0_19], %16 {strides = array<i32>} : memref<36x384xf32, #tpu.memory_space<vmem>>, vector<4x384xf32>,
    %c0_20 = arith.constant 0 : index
    %c0_21 = arith.constant 0 : index
    %c36 = arith.constant 36 : index
    %18 = vector.load %arg1[%c0_20, %c0_21, %c36] : memref<1x4x512xf32, #tpu.memory_space<vmem>>, vector<1x4x384xf32>
    %19 = vector.shape_cast %18 : vector<1x4x384xf32> to vector<4x384xf32>
    %c24 = arith.constant 24 : index
    %c0_22 = arith.constant 0 : index
    %20 = vector.load %arg9[%c24, %c0_22] : memref<36x384xf32, #tpu.memory_space<vmem>>, vector<4x384xf32>
    tpu.vector_store %arg9[%c24, %c0_22], %19 {strides = array<i32>} : memref<36x384xf32, #tpu.memory_space<vmem>>, vector<4x384xf32>,
    %c0_23 = arith.constant 0 : index
    %c0_24 = arith.constant 0 : index
    %c37 = arith.constant 37 : index
    %21 = vector.load %arg1[%c0_23, %c0_24, %c37] : memref<1x4x512xf32, #tpu.memory_space<vmem>>, vector<1x4x384xf32>
    %22 = vector.shape_cast %21 : vector<1x4x384xf32> to vector<4x384xf32>
    %c28 = arith.constant 28 : index
    %c0_25 = arith.constant 0 : index
    %23 = vector.load %arg9[%c28, %c0_25] : memref<36x384xf32, #tpu.memory_space<vmem>>, vector<4x384xf32>
    tpu.vector_store %arg9[%c28, %c0_25], %22 {strides = array<i32>} : memref<36x384xf32, #tpu.memory_space<vmem>>, vector<4x384xf32>,
    %c0_26 = arith.constant 0 : index
    %c0_27 = arith.constant 0 : index
    %c38 = arith.constant 38 : index
    %24 = vector.load %arg1[%c0_26, %c0_27, %c38] : memref<1x4x512xf32, #tpu.memory_space<vmem>>, vector<1x4x384xf32>
    %25 = vector.shape_cast %24 : vector<1x4x384xf32> to vector<4x384xf32>
    %c32 = arith.constant 32 : index
    %c0_28 = arith.constant 0 : index
    %26 = vector.load %arg9[%c32, %c0_28] : memref<36x384xf32, #tpu.memory_space<vmem>>, vector<4x384xf32>
    tpu.vector_store %arg9[%c32, %c0_28], %25 {strides = array<i32>} : memref<36x384xf32, #tpu.memory_space<vmem>>, vector<4x384xf32>,
    %c0_29 = arith.constant 0 : index
    %c0_30 = arith.constant 0 : index
    %27 = vector.load %arg2[%c0_29, %c0_30] : memref<8x36xf32, #tpu.memory_space<vmem>>, vector<8x36xf32>
    %c0_31 = arith.constant 0 : index
    %c0_32 = arith.constant 0 : index
    %28 = vector.load %arg9[%c0_31, %c0_32] : memref<36x384xf32, #tpu.memory_space<vmem>>, vector<36x384xf32>
    %cst = arith.constant dense<0.000000e+00> : vector<8x384xf32>
    %29 = tpu.matmul %27, %28, %cst {dimension_numbers = #tpu.dot_dimension_numbers<[1], [0], [0], [1], [0, 0, 1, 1], [], []>} : vector<8x36xf32>, vector<36x384xf32>, vector<8x384xf32> -> vector<8x384xf32>
    %c0_33 = arith.constant 0 : index
    %c0_34 = arith.constant 0 : index
    %30 = vector.load %arg9[%c0_33, %c0_34] : memref<36x384xf32, #tpu.memory_space<vmem>>, vector<36x384xf32>
    %cst_35 = arith.constant 0.000000e+00 : f32
    %31 = vector.broadcast %cst_35 : f32 to vector<36x384xf32>
    %32 = arith.maximumf %30, %31 : vector<36x384xf32>
    %c0_36 = arith.constant 0 : index
    %c0_37 = arith.constant 0 : index
    %33 = vector.load %arg9[%c0_36, %c0_37] : memref<36x384xf32, #tpu.memory_space<vmem>>, vector<36x384xf32>
    tpu.vector_store %arg9[%c0_36, %c0_37], %32 {strides = array<i32>} : memref<36x384xf32, #tpu.memory_space<vmem>>, vector<36x384xf32>,
    %c0_38 = arith.constant 0 : index
    %c0_39 = arith.constant 0 : index
    %34 = vector.load %arg3[%c0_38, %c0_39] : memref<4x36xf32, #tpu.memory_space<vmem>>, vector<4x36xf32>
    %c0_40 = arith.constant 0 : index
    %c0_41 = arith.constant 0 : index
    %35 = vector.load %arg9[%c0_40, %c0_41] : memref<36x384xf32, #tpu.memory_space<vmem>>, vector<36x384xf32>
    %cst_42 = arith.constant dense<0.000000e+00> : vector<4x384xf32>
    %36 = tpu.matmul %34, %35, %cst_42 {dimension_numbers = #tpu.dot_dimension_numbers<[1], [0], [0], [1], [0, 0, 1, 1], [], []>} : vector<4x36xf32>, vector<36x384xf32>, vector<4x384xf32> -> vector<4x384xf32>
    %c0_43 = arith.constant 0 : index
    %c0_44 = arith.constant 0 : index
    %37 = vector.load %arg6[%c0_43, %c0_44] : memref<4x1xf32, #tpu.memory_space<vmem>>, vector<4x1xf32>
    %38 = vector.broadcast %37 : vector<4x1xf32> to vector<4x384xf32>
    %39 = arith.addf %36, %38 : vector<4x384xf32>
    %cst_45 = arith.constant 0.000000e+00 : f32
    %40 = vector.broadcast %cst_45 : f32 to vector<4x384xf32>
    %41 = arith.maximumf %39, %40 : vector<4x384xf32>
    %c0_46 = arith.constant 0 : index
    %c0_47 = arith.constant 0 : index
    %42 = vector.load %arg7[%c0_46, %c0_47] : memref<1x384xf32, #tpu.memory_space<vmem>>, vector<1x384xf32>
    %43 = vector.broadcast %42 : vector<1x384xf32> to vector<4x384xf32>
    %44 = arith.mulf %41, %43 : vector<4x384xf32>
    %cst_48 = arith.constant 0.000000e+00 : f32
    %45 = vector.broadcast %cst_48 : f32 to vector<1x4x512xf32>
    %c0_49 = arith.constant 0 : index
    %c0_50 = arith.constant 0 : index
    %c0_51 = arith.constant 0 : index
    %46 = vector.load %arg10[%c0_49, %c0_50, %c0_51] : memref<1x4x512xf32, #tpu.memory_space<vmem>>, vector<1x4x512xf32>
    tpu.vector_store %arg10[%c0_49, %c0_50, %c0_51], %45 {strides = array<i32>} : memref<1x4x512xf32, #tpu.memory_space<vmem>>, vector<1x4x512xf32>,
    %c0_52 = arith.constant 0 : index
    %c0_53 = arith.constant 0 : index
    %c19_54 = arith.constant 19 : index
    %47 = vector.load %arg10[%c0_52, %c0_53, %c19_54] : memref<1x4x512xf32, #tpu.memory_space<vmem>>, vector<1x4x384xf32>
    %48 = vector.shape_cast %47 : vector<1x4x384xf32> to vector<4x384xf32>
    %49 = vector.shape_cast %44 : vector<4x384xf32> to vector<1x4x384xf32>
    tpu.vector_store %arg10[%c0_52, %c0_53, %c19_54], %49 {strides = array<i32>} : memref<1x4x512xf32, #tpu.memory_space<vmem>>, vector<1x4x384xf32>,
    %c0_55 = arith.constant 0 : index
    %c0_56 = arith.constant 0 : index
    %c0_57 = arith.constant 0 : index
    %50 = vector.load %arg10[%c0_55, %c0_56, %c0_57] : memref<1x4x512xf32, #tpu.memory_space<vmem>>, vector<1x4x384xf32>
    %51 = vector.shape_cast %50 : vector<1x4x384xf32> to vector<4x384xf32>
    %c0_58 = arith.constant 0 : index
    %c0_59 = arith.constant 0 : index
    %52 = vector.load %arg9[%c0_58, %c0_59] : memref<36x384xf32, #tpu.memory_space<vmem>>, vector<4x384xf32>
    tpu.vector_store %arg9[%c0_58, %c0_59], %51 {strides = array<i32>} : memref<36x384xf32, #tpu.memory_space<vmem>>, vector<4x384xf32>,
    %c0_60 = arith.constant 0 : index
    %c0_61 = arith.constant 0 : index
    %c1_62 = arith.constant 1 : index
    %53 = vector.load %arg10[%c0_60, %c0_61, %c1_62] : memref<1x4x512xf32, #tpu.memory_space<vmem>>, vector<1x4x384xf32>
    %54 = vector.shape_cast %53 : vector<1x4x384xf32> to vector<4x384xf32>
    %c4_63 = arith.constant 4 : index
    %c0_64 = arith.constant 0 : index
    %55 = vector.load %arg9[%c4_63, %c0_64] : memref<36x384xf32, #tpu.memory_space<vmem>>, vector<4x384xf32>
    tpu.vector_store %arg9[%c4_63, %c0_64], %54 {strides = array<i32>} : memref<36x384xf32, #tpu.memory_space<vmem>>, vector<4x384xf32>,
    %c0_65 = arith.constant 0 : index
    %c0_66 = arith.constant 0 : index
    %c2_67 = arith.constant 2 : index
    %56 = vector.load %arg10[%c0_65, %c0_66, %c2_67] : memref<1x4x512xf32, #tpu.memory_space<vmem>>, vector<1x4x384xf32>
    %57 = vector.shape_cast %56 : vector<1x4x384xf32> to vector<4x384xf32>
    %c8_68 = arith.constant 8 : index
    %c0_69 = arith.constant 0 : index
    %58 = vector.load %arg9[%c8_68, %c0_69] : memref<36x384xf32, #tpu.memory_space<vmem>>, vector<4x384xf32>
    tpu.vector_store %arg9[%c8_68, %c0_69], %57 {strides = array<i32>} : memref<36x384xf32, #tpu.memory_space<vmem>>, vector<4x384xf32>,
    %c0_70 = arith.constant 0 : index
    %c0_71 = arith.constant 0 : index
    %c18_72 = arith.constant 18 : index
    %59 = vector.load %arg10[%c0_70, %c0_71, %c18_72] : memref<1x4x512xf32, #tpu.memory_space<vmem>>, vector<1x4x384xf32>
    %60 = vector.shape_cast %59 : vector<1x4x384xf32> to vector<4x384xf32>
    %c12_73 = arith.constant 12 : index
    %c0_74 = arith.constant 0 : index
    %61 = vector.load %arg9[%c12_73, %c0_74] : memref<36x384xf32, #tpu.memory_space<vmem>>, vector<4x384xf32>
    tpu.vector_store %arg9[%c12_73, %c0_74], %60 {strides = array<i32>} : memref<36x384xf32, #tpu.memory_space<vmem>>, vector<4x384xf32>,
    %c0_75 = arith.constant 0 : index
    %c0_76 = arith.constant 0 : index
    %c19_77 = arith.constant 19 : index
    %62 = vector.load %arg10[%c0_75, %c0_76, %c19_77] : memref<1x4x512xf32, #tpu.memory_space<vmem>>, vector<1x4x384xf32>
    %63 = vector.shape_cast %62 : vector<1x4x384xf32> to vector<4x384xf32>
    %c16_78 = arith.constant 16 : index
    %c0_79 = arith.constant 0 : index
    %64 = vector.load %arg9[%c16_78, %c0_79] : memref<36x384xf32, #tpu.memory_space<vmem>>, vector<4x384xf32>
    tpu.vector_store %arg9[%c16_78, %c0_79], %63 {strides = array<i32>} : memref<36x384xf32, #tpu.memory_space<vmem>>, vector<4x384xf32>,
    %c0_80 = arith.constant 0 : index
    %c0_81 = arith.constant 0 : index
    %c20_82 = arith.constant 20 : index
    %65 = vector.load %arg10[%c0_80, %c0_81, %c20_82] : memref<1x4x512xf32, #tpu.memory_space<vmem>>, vector<1x4x384xf32>
    %66 = vector.shape_cast %65 : vector<1x4x384xf32> to vector<4x384xf32>
    %c20_83 = arith.constant 20 : index
    %c0_84 = arith.constant 0 : index
    %67 = vector.load %arg9[%c20_83, %c0_84] : memref<36x384xf32, #tpu.memory_space<vmem>>, vector<4x384xf32>
    tpu.vector_store %arg9[%c20_83, %c0_84], %66 {strides = array<i32>} : memref<36x384xf32, #tpu.memory_space<vmem>>, vector<4x384xf32>,
    %c0_85 = arith.constant 0 : index
    %c0_86 = arith.constant 0 : index
    %c36_87 = arith.constant 36 : index
    %68 = vector.load %arg10[%c0_85, %c0_86, %c36_87] : memref<1x4x512xf32, #tpu.memory_space<vmem>>, vector<1x4x384xf32>
    %69 = vector.shape_cast %68 : vector<1x4x384xf32> to vector<4x384xf32>
    %c24_88 = arith.constant 24 : index
    %c0_89 = arith.constant 0 : index
    %70 = vector.load %arg9[%c24_88, %c0_89] : memref<36x384xf32, #tpu.memory_space<vmem>>, vector<4x384xf32>
    tpu.vector_store %arg9[%c24_88, %c0_89], %69 {strides = array<i32>} : memref<36x384xf32, #tpu.memory_space<vmem>>, vector<4x384xf32>,
    %c0_90 = arith.constant 0 : index
    %c0_91 = arith.constant 0 : index
    %c37_92 = arith.constant 37 : index
    %71 = vector.load %arg10[%c0_90, %c0_91, %c37_92] : memref<1x4x512xf32, #tpu.memory_space<vmem>>, vector<1x4x384xf32>
    %72 = vector.shape_cast %71 : vector<1x4x384xf32> to vector<4x384xf32>
    %c28_93 = arith.constant 28 : index
    %c0_94 = arith.constant 0 : index
    %73 = vector.load %arg9[%c28_93, %c0_94] : memref<36x384xf32, #tpu.memory_space<vmem>>, vector<4x384xf32>
    tpu.vector_store %arg9[%c28_93, %c0_94], %72 {strides = array<i32>} : memref<36x384xf32, #tpu.memory_space<vmem>>, vector<4x384xf32>,
    %c0_95 = arith.constant 0 : index
    %c0_96 = arith.constant 0 : index
    %c38_97 = arith.constant 38 : index
    %74 = vector.load %arg10[%c0_95, %c0_96, %c38_97] : memref<1x4x512xf32, #tpu.memory_space<vmem>>, vector<1x4x384xf32>
    %75 = vector.shape_cast %74 : vector<1x4x384xf32> to vector<4x384xf32>
    %c32_98 = arith.constant 32 : index
    %c0_99 = arith.constant 0 : index
    %76 = vector.load %arg9[%c32_98, %c0_99] : memref<36x384xf32, #tpu.memory_space<vmem>>, vector<4x384xf32>
    tpu.vector_store %arg9[%c32_98, %c0_99], %75 {strides = array<i32>} : memref<36x384xf32, #tpu.memory_space<vmem>>, vector<4x384xf32>,
    %c0_100 = arith.constant 0 : index
    %c0_101 = arith.constant 0 : index
    %77 = vector.load %arg4[%c0_100, %c0_101] : memref<8x36xf32, #tpu.memory_space<vmem>>, vector<8x36xf32>
    %c0_102 = arith.constant 0 : index
    %c0_103 = arith.constant 0 : index
    %78 = vector.load %arg9[%c0_102, %c0_103] : memref<36x384xf32, #tpu.memory_space<vmem>>, vector<36x384xf32>
    %cst_104 = arith.constant dense<0.000000e+00> : vector<8x384xf32>
    %79 = tpu.matmul %77, %78, %cst_104 {dimension_numbers = #tpu.dot_dimension_numbers<[1], [0], [0], [1], [0, 0, 1, 1], [], []>} : vector<8x36xf32>, vector<36x384xf32>, vector<8x384xf32> -> vector<8x384xf32>
    %80 = arith.addf %29, %79 : vector<8x384xf32>
    %c0_105 = arith.constant 0 : index
    %c0_106 = arith.constant 0 : index
    %81 = vector.load %arg5[%c0_105, %c0_106] : memref<8x1xf32, #tpu.memory_space<vmem>>, vector<8x1xf32>
    %82 = vector.broadcast %81 : vector<8x1xf32> to vector<8x384xf32>
    %83 = arith.addf %80, %82 : vector<8x384xf32>
    %84 = vector.extract_strided_slice %83 {offsets = [0, 0], sizes = [8, 16], strides = [1, 1]} : vector<8x384xf32> to vector<8x16xf32>
    %c0_107 = arith.constant 0 : index
    %c0_108 = arith.constant 0 : index
    %c0_109 = arith.constant 0 : index
    %85 = vector.load %arg8[%c0_107, %c0_108, %c0_109] : memref<1x8x128xf32, #tpu.memory_space<vmem>>, vector<1x8x16xf32>
    %86 = vector.shape_cast %85 : vector<1x8x16xf32> to vector<8x16xf32>
    %87 = vector.shape_cast %84 : vector<8x16xf32> to vector<1x8x16xf32>
    tpu.vector_store %arg8[%c0_107, %c0_108, %c0_109], %87 {strides = array<i32>} : memref<1x8x128xf32, #tpu.memory_space<vmem>>, vector<1x8x16xf32>,
    %88 = vector.extract_strided_slice %83 {offsets = [0, 36], sizes = [8, 16], strides = [1, 1]} : vector<8x384xf32> to vector<8x16xf32>
    %c0_110 = arith.constant 0 : index
    %c0_111 = arith.constant 0 : index
    %c16_112 = arith.constant 16 : index
    %89 = vector.load %arg8[%c0_110, %c0_111, %c16_112] : memref<1x8x128xf32, #tpu.memory_space<vmem>>, vector<1x8x16xf32>
    %90 = vector.shape_cast %89 : vector<1x8x16xf32> to vector<8x16xf32>
    %91 = vector.shape_cast %88 : vector<8x16xf32> to vector<1x8x16xf32>
    tpu.vector_store %arg8[%c0_110, %c0_111, %c16_112], %91 {strides = array<i32>} : memref<1x8x128xf32, #tpu.memory_space<vmem>>, vector<1x8x16xf32>,
    %92 = vector.extract_strided_slice %83 {offsets = [0, 72], sizes = [8, 16], strides = [1, 1]} : vector<8x384xf32> to vector<8x16xf32>
    %c0_113 = arith.constant 0 : index
    %c0_114 = arith.constant 0 : index
    %c32_115 = arith.constant 32 : index
    %93 = vector.load %arg8[%c0_113, %c0_114, %c32_115] : memref<1x8x128xf32, #tpu.memory_space<vmem>>, vector<1x8x16xf32>
    %94 = vector.shape_cast %93 : vector<1x8x16xf32> to vector<8x16xf32>
    %95 = vector.shape_cast %92 : vector<8x16xf32> to vector<1x8x16xf32>
    tpu.vector_store %arg8[%c0_113, %c0_114, %c32_115], %95 {strides = array<i32>} : memref<1x8x128xf32, #tpu.memory_space<vmem>>, vector<1x8x16xf32>,
    %96 = vector.extract_strided_slice %83 {offsets = [0, 108], sizes = [8, 16], strides = [1, 1]} : vector<8x384xf32> to vector<8x16xf32>
    %c0_116 = arith.constant 0 : index
    %c0_117 = arith.constant 0 : index
    %c48 = arith.constant 48 : index
    %97 = vector.load %arg8[%c0_116, %c0_117, %c48] : memref<1x8x128xf32, #tpu.memory_space<vmem>>, vector<1x8x16xf32>
    %98 = vector.shape_cast %97 : vector<1x8x16xf32> to vector<8x16xf32>
    %99 = vector.shape_cast %96 : vector<8x16xf32> to vector<1x8x16xf32>
    tpu.vector_store %arg8[%c0_116, %c0_117, %c48], %99 {strides = array<i32>} : memref<1x8x128xf32, #tpu.memory_space<vmem>>, vector<1x8x16xf32>,
    %100 = vector.extract_strided_slice %83 {offsets = [0, 144], sizes = [8, 16], strides = [1, 1]} : vector<8x384xf32> to vector<8x16xf32>
    %c0_118 = arith.constant 0 : index
    %c0_119 = arith.constant 0 : index
    %c64 = arith.constant 64 : index
    %101 = vector.load %arg8[%c0_118, %c0_119, %c64] : memref<1x8x128xf32, #tpu.memory_space<vmem>>, vector<1x8x16xf32>
    %102 = vector.shape_cast %101 : vector<1x8x16xf32> to vector<8x16xf32>
    %103 = vector.shape_cast %100 : vector<8x16xf32> to vector<1x8x16xf32>
    tpu.vector_store %arg8[%c0_118, %c0_119, %c64], %103 {strides = array<i32>} : memref<1x8x128xf32, #tpu.memory_space<vmem>>, vector<1x8x16xf32>,
    %104 = vector.extract_strided_slice %83 {offsets = [0, 180], sizes = [8, 16], strides = [1, 1]} : vector<8x384xf32> to vector<8x16xf32>
    %c0_120 = arith.constant 0 : index
    %c0_121 = arith.constant 0 : index
    %c80 = arith.constant 80 : index
    %105 = vector.load %arg8[%c0_120, %c0_121, %c80] : memref<1x8x128xf32, #tpu.memory_space<vmem>>, vector<1x8x16xf32>
    %106 = vector.shape_cast %105 : vector<1x8x16xf32> to vector<8x16xf32>
    %107 = vector.shape_cast %104 : vector<8x16xf32> to vector<1x8x16xf32>
    tpu.vector_store %arg8[%c0_120, %c0_121, %c80], %107 {strides = array<i32>} : memref<1x8x128xf32, #tpu.memory_space<vmem>>, vector<1x8x16xf32>,
    %108 = vector.extract_strided_slice %83 {offsets = [0, 216], sizes = [8, 16], strides = [1, 1]} : vector<8x384xf32> to vector<8x16xf32>
    %c0_122 = arith.constant 0 : index
    %c0_123 = arith.constant 0 : index
    %c96 = arith.constant 96 : index
    %109 = vector.load %arg8[%c0_122, %c0_123, %c96] : memref<1x8x128xf32, #tpu.memory_space<vmem>>, vector<1x8x16xf32>
    %110 = vector.shape_cast %109 : vector<1x8x16xf32> to vector<8x16xf32>
    %111 = vector.shape_cast %108 : vector<8x16xf32> to vector<1x8x16xf32>
    tpu.vector_store %arg8[%c0_122, %c0_123, %c96], %111 {strides = array<i32>} : memref<1x8x128xf32, #tpu.memory_space<vmem>>, vector<1x8x16xf32>,
    %112 = vector.extract_strided_slice %83 {offsets = [0, 252], sizes = [8, 16], strides = [1, 1]} : vector<8x384xf32> to vector<8x16xf32>
    %c0_124 = arith.constant 0 : index
    %c0_125 = arith.constant 0 : index
    %c112 = arith.constant 112 : index
    %113 = vector.load %arg8[%c0_124, %c0_125, %c112] : memref<1x8x128xf32, #tpu.memory_space<vmem>>, vector<1x8x16xf32>
    %114 = vector.shape_cast %113 : vector<1x8x16xf32> to vector<8x16xf32>
    %115 = vector.shape_cast %112 : vector<8x16xf32> to vector<1x8x16xf32>
    tpu.vector_store %arg8[%c0_124, %c0_125, %c112], %115 {strides = array<i32>} : memref<1x8x128xf32, #tpu.memory_space<vmem>>, vector<1x8x16xf32>,
    return
  }
  func.func @transform_0(%arg0: i32) -> (i32, i32, i32) {
    %c0_i32 = arith.constant 0 : i32
    %c0_i32_0 = arith.constant 0 : i32
    %c0_i32_1 = arith.constant 0 : i32
    return %arg0, %c0_i32, %c0_i32_0 : i32, i32, i32
  }
  func.func @transform_1(%arg0: i32) -> (i32, i32) {
    %c0_i32 = arith.constant 0 : i32
    %c0_i32_0 = arith.constant 0 : i32
    %c0_i32_1 = arith.constant 0 : i32
    return %c0_i32, %c0_i32_0 : i32, i32
  }
  func.func @transform_2(%arg0: i32) -> (i32, i32) {
    %c0_i32 = arith.constant 0 : i32
    %c0_i32_0 = arith.constant 0 : i32
    %c0_i32_1 = arith.constant 0 : i32
    return %c0_i32, %c0_i32_0 : i32, i32
  }
  func.func @transform_3(%arg0: i32) -> (i32, i32) {
    %c0_i32 = arith.constant 0 : i32
    %c0_i32_0 = arith.constant 0 : i32
    %c0_i32_1 = arith.constant 0 : i32
    return %c0_i32, %c0_i32_0 : i32, i32
  }
  func.func @transform_4(%arg0: i32) -> (i32, i32) {
    %c0_i32 = arith.constant 0 : i32
    %c0_i32_0 = arith.constant 0 : i32
    %c0_i32_1 = arith.constant 0 : i32
    return %c0_i32, %c0_i32_0 : i32, i32
  }
  func.func @transform_5(%arg0: i32) -> (i32, i32) {
    %c0_i32 = arith.constant 0 : i32
    %c0_i32_0 = arith.constant 0 : i32
    %c0_i32_1 = arith.constant 0 : i32
    return %c0_i32, %c0_i32_0 : i32, i32
  }
  func.func @transform_6(%arg0: i32) -> (i32, i32) {
    %c0_i32 = arith.constant 0 : i32
    %c0_i32_0 = arith.constant 0 : i32
    %c0_i32_1 = arith.constant 0 : i32
    return %c0_i32, %c0_i32_0 : i32, i32
  }
  func.func @transform_7(%arg0: i32) -> (i32, i32, i32) {
    %c0_i32 = arith.constant 0 : i32
    %c0_i32_0 = arith.constant 0 : i32
    %c0_i32_1 = arith.constant 0 : i32
    return %arg0, %c0_i32, %c0_i32_0 : i32, i32, i32
  }
}

</mosaic_0001>

<bundles_post_ra>
// kernel: down_conv_block_pallas.1
= control target key start
LH: loop header
LB: loop body
LE: loop exit
PB: predicated region body
PF: predicated region fallthrough
CT: control target
= control target key end

     0   :  { %s1343_s24 = smov 0   ;;  %s1681_s0 = inlined_call_operand.vmem [shape: f32[2,4,512], index: 0, kind: input, shape index: {}]   ;;  %s1682_s1 = inlined_call_operand.vmem [shape: f32[8,36], index: 1, kind: input, shape index: {}]   ;;  %s1683_s2 = inlined_call_operand.vmem [shape: f32[4,36], index: 2, kind: input, shape index: {}]   ;;  %s1684_s3 = inlined_call_operand.vmem [shape: f32[8,36], index: 3, kind: input, shape index: {}]   ;;  %s1685_s4 = inlined_call_operand.vmem [shape: f32[8,1], index: 4, kind: input, shape index: {}]   ;;  %s1686_s5 = inlined_call_operand.vmem [shape: f32[4,1], index: 5, kind: input, shape index: {}]   ;;  %s1687_s6 = inlined_call_operand.vmem [shape: f32[1,384], index: 6, kind: input, shape index: {}]   ;;  %s1688_s7 = inlined_call_operand.vmem [shape: f32[2,8,128], index: 7, kind: output, shape index: {}]  }
   0x1 LB: > { %s1221_s25 = sadd.s32 4294967295, %s1284_s24   ;;  %p1225_p0 = scmp.ge.s32.totalorder %s1284_s24, 1  ;;  %s1284_s24 = sphi %s1343_s24, %s17_s24  }
   0x2   : > { %p237_p1 = scmp.lt.s32.totalorder %s1284_s24, 3 }
   0x4   : > { %p238_p2 = pnand %p1225_p0, %p237_p1 }
   0x5   : > { %p268_p3 = scmp.lt.s32.totalorder (!%p238_p2), %s1221_s25, 1  ;;  %s1286_s30 = smov (!%p238_p2), 127  }
   0x6   : > { %241 = sbr.rel (%p238_p2) target bundleno = 1002 (0x3ea), region = 48  ;;  %s1287_s8 = smov (!%p238_p2), 126  }
   0x7   : > { %s1288_s9 = smov (!%p238_p2), 110   ;;  %s1289_s10 = smov (!%p238_p2), 109  }
   0x8   : > { %s1290_s11 = smov (!%p238_p2), 108   ;;  %s1291_s12 = smov (!%p238_p2), 92  }
   0x9   : > { %s1292_s13 = smov (!%p238_p2), 91   ;;  %s1293_s14 = smov (!%p238_p2), 90  }
   0xa   : > { %s1296_s21 = smov (!%p238_p2), 19   ;;  %s1301_s15 = smov (!%p238_p2), 48  }
   0xb   : > { %s1690_s25 = smov (!%p268_p3, %s1221_s25), 1  ;;  %vm313_vm0 = vcmask 1039360   ;;  %vm342_vm1 = vcmask 1031168   ;;  %vm401_vm2 = vcmask 891904   ;;  %vm372_vm3 = vcmask 900096   ;;  %s1302_s16 = smov 116  }
   0xc   : > { %s1249_s26 = sshll.u32 %s1690_s25, 4  ;;  %vm431_vm4 = vcmask 883712   ;;  %vm490_vm5 = vcmask 744448   ;;  %vm460_vm6 = vcmask 752640   ;;  %vm519_vm7 = vcmask 736256  }
   0xd   : > { %s272_s29 = scalar_lea.vmem %s1681_s0, %s1249_s26  ;;  %vm601_vm8 = vcmask 1043456   ;;  %vm597_vm9 = vcmask 293888   ;;  %vm704_vm10 = vcmask 1043608   ;;  %vm705_vm11 = vcmask 1047556  }
   0xe   : > { %v278_v0 = vld [vmem:[%s272_s29 + $0x8] sm:$0xf]  ;;  %v1357_v1 = vld [vmem:[%s272_s29] sm:$0xff]  ;;  %vm698_vm12 = vcmask 154624   ;;  %vm706_vm13 = vmor %vm705_vm11, %vm704_vm10  ;;  %vm708_vm14 = vcmask 154628  }
   0xf   : > { %283 = vst [vmem:[#allocation1 + $0x10] ss:$2 sm:$0xff] %v278_v0  ;;  %v1360_v2 = vld [vmem:[%s272_s29 + $0x8] sm:$0xff]  ;;  %vm709_vm15 = vmor %vm708_vm14, %vm601_vm8 }
  0x10   : > { %281 = vst [vmem:[#allocation1] ss:$2 sm:$0xff] %v1357_v1 }
  0x16   : > { %v286_v3 = vld.sshfl [vmem:[#allocation1 + $0x10] sm:$0xff pattern:$0x75316420] }
  0x17   : > { %300 = vst [vmem:[#allocation1 + $0x11] ss:$2 sm:$0xff] %v1360_v2  ;;  %v284_v4 = vld.sshfl [vmem:[#allocation1] sm:$0xff pattern:$0x75316420] }
  0x18   : > { %292 = vst [vmem:[#allocation2 + $0x58] sm:$0xf] %v286_v3  ;;  %v285_v5 = vld.sshfl [vmem:[#allocation1 + $0x8] sm:$0xff pattern:$0x75316420] }
  0x19   : > { %298 = vst [vmem:[#allocation1 + $0x1] ss:$2 sm:$0xff] %v1357_v1 }
  0x1a   : > { %290 = vst [vmem:[#allocation2 + $0x30] sm:$0xf] %v284_v4 }
  0x1b   : > { %291 = vst [vmem:[#allocation2] sm:$0xf] %v285_v5 }
  0x1e   : > { %v303_v6 = vld.sshfl [vmem:[#allocation1 + $0x10] sm:$0xff pattern:$0x75316420]  ;;  %v1364_v7 = vld.sshfl [vmem:[#allocation1 + $0x18] sm:$0xff pattern:$0x75316420] }
  0x1f   : > { %309 = vrot.lane.b32.xlu2 %v303_v6, %s1286_s30  ;;  %329 = vst [vmem:[#allocation1 + $0x10] ss:$2 sm:$0xff] %v1360_v2 }
  0x20   : > { %v302_v8 = vld.sshfl [vmem:[#allocation1 + $0x8] sm:$0xff pattern:$0x75316420]  ;;  %v1368_v9 = vld.sshfl [vmem:[#allocation1] sm:$0xff pattern:$0x75316420] }
  0x21   : > { %307 = vrot.lane.b32.xlu1 %v302_v8, %s1286_s30  ;;  %327 = vst [vmem:[#allocation1] ss:$2 sm:$0xff] %v1357_v1 }
  0x26   : > { %v332_v10 = vld.sshfl [vmem:[#allocation1 + $0x10] sm:$0xff pattern:$0x75316420]  ;;  %v1372_v11 = vld.sshfl [vmem:[#allocation1 + $0x18] sm:$0xff pattern:$0x75316420] }
  0x27   : > { %338 = vrot.lane.b32.xlu0 %v332_v10, %s1287_s8  ;;  %359 = vst [vmem:[#allocation1 + $0x11] ss:$2 sm:$0xff] %v1360_v2 }
  0x28   : > { %v331_v12 = vld.sshfl [vmem:[#allocation1 + $0x8] sm:$0xff pattern:$0x75316420]  ;;  %v330_v13 = vld.sshfl [vmem:[#allocation1] sm:$0xff pattern:$0x75316420] }
  0x29   : > { %336 = vrot.lane.b32.xlu2 %v331_v12, %s1287_s8  ;;  %357 = vst [vmem:[#allocation1 + $0x1] ss:$2 sm:$0xff] %v1357_v1 }
  0x2e   : > { %v362_v14 = vld.sshfl [vmem:[#allocation1 + $0x10] sm:$0xff pattern:$0x75316420]  ;;  %v1378_v15 = vld.sshfl [vmem:[#allocation1 + $0x18] sm:$0xff pattern:$0x75316420] }
  0x2f   : > { %334 = vrot.lane.b32.xlu0 %v330_v13, %s1287_s8  ;;  %388 = vst [vmem:[#allocation1 + $0x10] ss:$2 sm:$0xff] %v1360_v2 }
  0x30   : > { %v361_v16 = vld.sshfl [vmem:[#allocation1 + $0x8] sm:$0xff pattern:$0x75316420]  ;;  %v360_v17 = vld.sshfl [vmem:[#allocation1] sm:$0xff pattern:$0x75316420] }
  0x31   : > { %368 = vrot.lane.b32.xlu2 %v362_v14, %s1288_s9  ;;  %366 = vrot.lane.b32.xlu1 %v361_v16, %s1288_s9  ;;  %386 = vst [vmem:[#allocation1] ss:$2 sm:$0xff] %v1357_v1 }
  0x36   : > { %v391_v18 = vld.sshfl [vmem:[#allocation1 + $0x10] sm:$0xff pattern:$0x75316420]  ;;  %v392_v19 = vld.sshfl [vmem:[#allocation1 + $0x18] sm:$0xff pattern:$0x75316420] }
  0x37   : > { %418 = vst [vmem:[#allocation1 + $0x11] ss:$2 sm:$0xff] %v1360_v2 }
  0x38   : > { %v389_v20 = vld.sshfl [vmem:[#allocation1] sm:$0xff pattern:$0x75316420]  ;;  %v390_v21 = vld.sshfl [vmem:[#allocation1 + $0x8] sm:$0xff pattern:$0x75316420] }
  0x39   : > { %397 = vrot.lane.b32.xlu2 %v391_v18, %s1289_s10  ;;  %364 = vrot.lane.b32.xlu1 %v360_v17, %s1288_s9  ;;  %416 = vst [vmem:[#allocation1 + $0x1] ss:$2 sm:$0xff] %v1357_v1 }
  0x3a   : > { %393 = vrot.lane.b32.xlu0 %v389_v20, %s1289_s10 }
  0x3e   : > { %v421_v22 = vld.sshfl [vmem:[#allocation1 + $0x10] sm:$0xff pattern:$0x75316420]  ;;  %v422_v23 = vld.sshfl [vmem:[#allocation1 + $0x18] sm:$0xff pattern:$0x75316420] }
  0x3f   : > { %447 = vst [vmem:[#allocation1 + $0x10] ss:$2 sm:$0xff] %v1360_v2 }
  0x40   : > { %v420_v24 = vld.sshfl [vmem:[#allocation1 + $0x8] sm:$0xff pattern:$0x75316420]  ;;  %v419_v25 = vld.sshfl [vmem:[#allocation1] sm:$0xff pattern:$0x75316420] }
  0x41   : > { %399 = vrot.lane.b32.xlu2 %v392_v19, %s1289_s10  ;;  %395 = vrot.lane.b32.xlu1 %v390_v21, %s1289_s10  ;;  %445 = vst [vmem:[#allocation1] ss:$2 sm:$0xff] %v1357_v1 }
  0x42   : > { %425 = vrot.lane.b32.xlu0 %v420_v24, %s1290_s11 }
  0x46   : > { %v450_v26 = vld.sshfl [vmem:[#allocation1 + $0x10] sm:$0xff pattern:$0x75316420]  ;;  %v451_v27 = vld.sshfl [vmem:[#allocation1 + $0x18] sm:$0xff pattern:$0x75316420] }
  0x47   : > { %477 = vst [vmem:[#allocation1 + $0x11] ss:$2 sm:$0xff] %v1360_v2 }
  0x48   : > { %v448_v28 = vld.sshfl [vmem:[#allocation1] sm:$0xff pattern:$0x75316420]  ;;  %v449_v29 = vld.sshfl [vmem:[#allocation1 + $0x8] sm:$0xff pattern:$0x75316420] }
  0x49   : > { %427 = vrot.lane.b32.xlu1 %v421_v22, %s1290_s11  ;;  %452 = vrot.lane.b32.xlu2 %v448_v28, %s1291_s12  ;;  %475 = vst [vmem:[#allocation1 + $0x1] ss:$2 sm:$0xff] %v1357_v1 }
  0x4a   : > { %429 = vrot.lane.b32.xlu0 %v422_v23, %s1290_s11 }
  0x4e   : > { %v481_v30 = vld.sshfl [vmem:[#allocation1 + $0x18] sm:$0xff pattern:$0x75316420]  ;;  %v480_v31 = vld.sshfl [vmem:[#allocation1 + $0x10] sm:$0xff pattern:$0x75316420] }
  0x4f   : > { %506 = vst [vmem:[#allocation1 + $0x10] ss:$2 sm:$0xff] %v1360_v2 }
  0x50   : > { %v478_v32 = vld.sshfl [vmem:[#allocation1] sm:$0xff pattern:$0x75316420]  ;;  %v479_v33 = vld.sshfl [vmem:[#allocation1 + $0x8] sm:$0xff pattern:$0x75316420] }
  0x51   : > { %423 = vrot.lane.b32.xlu1 %v419_v25, %s1290_s11  ;;  %458 = vrot.lane.b32.xlu2 %v451_v27, %s1291_s12  ;;  %504 = vst [vmem:[#allocation1] ss:$2 sm:$0xff] %v1357_v1 }
  0x52   : > { %482 = vrot.lane.b32.xlu0 %v478_v32, %s1292_s13 }
  0x56   : > { %v509_v35 = vld.sshfl [vmem:[#allocation1 + $0x10] sm:$0xff pattern:$0x75316420]  ;;  %v510_v36 = vld.sshfl [vmem:[#allocation1 + $0x18] sm:$0xff pattern:$0x75316420] }
  0x58   : > { %v508_v34 = vld.sshfl [vmem:[#allocation1 + $0x8] sm:$0xff pattern:$0x75316420]  ;;  %v507_v37 = vld.sshfl [vmem:[#allocation1] sm:$0xff pattern:$0x75316420] }
  0x59   : > { %454 = vrot.lane.b32.xlu1 %v449_v29, %s1291_s12  ;;  %484 = vrot.lane.b32.xlu2 %v479_v33, %s1292_s13 }
  0x5a   : > { %488 = vrot.lane.b32.xlu0 %v481_v30, %s1292_s13 }
  0x61   : > { %456 = vrot.lane.b32.xlu1 %v450_v26, %s1291_s12  ;;  %486 = vrot.lane.b32.xlu2 %v480_v31, %s1292_s13 }
  0x62   : > { %513 = vrot.lane.b32.xlu0 %v508_v34, %s1293_s14 }
  0x69   : > { %305 = vrot.lane.b32.xlu1 %v1368_v9, %s1286_s30  ;;  %340 = vrot.lane.b32.xlu2 %v1372_v11, %s1287_s8 }
  0x6a   : > { %515 = vrot.lane.b32.xlu0 %v509_v35, %s1293_s14 }
  0x71   : > { %517 = vrot.lane.b32.xlu1 %v510_v36, %s1293_s14 }
  0x72   : > { %511 = vrot.lane.b32.xlu0 %v507_v37, %s1293_s14 }
  0x79   : > { %311 = vrot.lane.b32.xlu1 %v1364_v7, %s1286_s30  ;;  %v1420_v38 = vpop.permute.xlu2 %309 }
  0x7a   : > { %370 = vrot.lane.b32.xlu0 %v1378_v15, %s1288_s9 }
  0x83   : > { %v337_v39 = vpop.permute.xlu2 %336 }
  0x8b   : > { %v1424_v40 = vpop.permute.xlu2 %368 }
  0x93   : > { %v398_v41 = vpop.permute.xlu2 %397  ;;  %v1426_v42 = vpop.permute.xlu1 %307 }
  0x94   : > { %v315_v43 = vsel %vm313_vm0, %v1426_v42, %v1420_v38 }
  0x95   : > { %321 = vst [vmem:[#allocation2] sm:$0xf0] %v315_v43 }
  0x99   : > { %v339_v44 = vpop.permute.xlu0 %338 }
  0x9a   : > { %v344_v45 = vsel %vm342_vm1, %v337_v39, %v339_v44 }
  0x9b   : > { %350 = vst [vmem:[#allocation2 + $0x50] sm:$0xf] %v344_v45  ;;  %v400_v46 = vpop.permute.xlu2 %399 }
  0x9c   : > { %v1432_v47 = vld [vmem:[#allocation2] sm:$0xff]  ;;  %v404_v48 = vsel %vm401_vm2, %v398_v41, %v400_v46 }
  0x9d   : > { %v546_v49 = vmax.f32 %v1432_v47, 0.0  ;;  %410 = vst [vmem:[#allocation2 + $0x40] sm:$0xf] %v404_v48 }
  0x9f   : > { %561 = vst [vmem:[#allocation2] sm:$0xff] %v546_v49 }
  0xa1   : > { %v335_v50 = vpop.permute.xlu0 %334 }
  0xa2   : > { %v343_v51 = vsel %vm342_vm1, %v335_v50, %v337_v39 }
  0xa3   : > { %349 = vst [vmem:[#allocation2 + $0x18] sm:$0xf] %v343_v51  ;;  %v367_v52 = vpop.permute.xlu1 %366  ;;  %v453_v53 = vpop.permute.xlu2 %452 }
  0xa4   : > { %v374_v54 = vsel %vm372_vm3, %v367_v52, %v1424_v40 }
  0xa5   : > { %380 = vst [vmem:[#allocation2 + $0x50] sm:$0xf0] %v374_v54 }
  0xab   : > { %v365_v55 = vpop.permute.xlu1 %364  ;;  %v459_v56 = vpop.permute.xlu2 %458 }
  0xac   : > { %v1441_v57 = vld [vmem:[#allocation2 + $0x50] sm:$0xff]  ;;  %v373_v58 = vsel %vm372_vm3, %v365_v55, %v367_v52  ;;  %v394_v59 = vpop.permute.xlu0 %393  ;;  %v591_v52 = vld [vmem:[%s1686_s5] sm:$0xf] }
  0xad   : > { %v549_v60 = vmax.f32 %v1441_v57, 0.0  ;;  %379 = vst [vmem:[#allocation2 + $0x18] sm:$0xf0] %v373_v58 }
  0xaf   : > { %564 = vst [vmem:[#allocation2 + $0x50] sm:$0xff] %v549_v60 }
  0xb3   : > { %v396_v61 = vpop.permute.xlu1 %395  ;;  %v485_v62 = vpop.permute.xlu2 %484 }
  0xb4   : > { %v1447_v63 = vld [vmem:[#allocation2 + $0x18] sm:$0xff]  ;;  %v402_v0 = vsel %vm401_vm2, %v394_v59, %v396_v61  ;;  %v403_v1 = vsel %vm401_vm2, %v396_v61, %v398_v41  ;;  %v426_v2 = vpop.permute.xlu0 %425 }
  0xb5   : > { %v548_v3 = vmax.f32 %v1447_v63, 0.0  ;;  %408 = vst [vmem:[#allocation2 + $0x8] sm:$0xf] %v402_v0 }
  0xb6   : > { %409 = vst [vmem:[#allocation2 + $0x48] sm:$0xf] %v403_v1 }
  0xb7   : > { %563 = vst [vmem:[#allocation2 + $0x18] sm:$0xff] %v548_v3 }
  0xbb   : > { %v428_v4 = vpop.permute.xlu1 %427  ;;  %v487_v5 = vpop.permute.xlu2 %486 }
  0xbc   : > { %v433_v6 = vsel %vm431_vm4, %v426_v2, %v428_v4  ;;  %v430_v7 = vpop.permute.xlu0 %429  ;;  %v492_v8 = vsel %vm490_vm5, %v485_v62, %v487_v5 }
  0xbd   : > { %439 = vst [vmem:[#allocation2 + $0x48] sm:$0xf0] %v433_v6  ;;  %v434_v9 = vsel %vm431_vm4, %v428_v4, %v430_v7  ;;  %v575_v6 = vld [vmem:[%s1683_s2] sm:$0xf] }
  0xbe   : > { %440 = vst [vmem:[#allocation2 + $0x40] sm:$0xf0] %v434_v9 }
  0xbf   : > { %498 = vst [vmem:[#allocation2 + $0x10] sm:$0xf0] %v492_v8  ;;  %v674_v8 = vld [vmem:[%s1687_s6] sm:$0x7] }
  0xc3   : > { %v424_v10 = vpop.permute.xlu1 %423  ;;  %v341_v11 = vpop.permute.xlu2 %340 }
  0xc4   : > { %v1457_v12 = vld [vmem:[#allocation2 + $0x48] sm:$0xff]  ;;  %v432_v13 = vsel %vm431_vm4, %v424_v10, %v426_v2  ;;  %v345_v14 = vsel %vm342_vm1, %v339_v44, %v341_v11  ;;  %v483_v15 = vpop.permute.xlu0 %482  ;;  %v677_v11 = vperm.slane %v674_v8, 1 }
  0xc5   : > { %v552_v16 = vmax.f32 %v1457_v12, 0.0  ;;  %v1462_v17 = vld [vmem:[#allocation2 + $0x40] sm:$0xff]  ;;  %438 = vst [vmem:[#allocation2 + $0x8] sm:$0xf0] %v432_v13  ;;  %v491_v19 = vsel %vm490_vm5, %v483_v15, %v485_v62 }
  0xc6   : > { %v553_v18 = vmax.f32 %v1462_v17, 0.0  ;;  %351 = vst [vmem:[#allocation2 + $0x68] sm:$0xf] %v345_v14 }
  0xc7   : > { %567 = vst [vmem:[#allocation2 + $0x48] sm:$0xff] %v552_v16 }
  0xc8   : > { %568 = vst [vmem:[#allocation2 + $0x40] sm:$0xff] %v553_v18 }
  0xc9   : > { %497 = vst [vmem:[#allocation2 + $0x20] sm:$0xf0] %v491_v19 }
  0xcb   : > { %v455_v20 = vpop.permute.xlu1 %454 }
  0xcc   : > { %v1470_v21 = vld [vmem:[#allocation2 + $0x8] sm:$0xff]  ;;  %v461_v22 = vsel %vm460_vm6, %v453_v53, %v455_v20  ;;  %v489_v23 = vpop.permute.xlu0 %488  ;;  %v1294_v53 = vmov 0  }
  0xcd   : > { %v551_v24 = vmax.f32 %v1470_v21, 0.0  ;;  %467 = vst [vmem:[#allocation2 + $0x20] sm:$0xf] %v461_v22  ;;  %v493_v25 = vsel %vm490_vm5, %v487_v5, %v489_v23  ;;  %1275 = vset.pattern.permute.xlu2 %v1294_v53  ;;  %1276 = vset.pattern.permute.xlu1 %v1294_v53  ;;  %v678_v22 = vperm.slane %v674_v8, 2 }
  0xce   : > { %499 = vst [vmem:[#allocation2 + $0x38] sm:$0xf0] %v493_v25  ;;  %594 = vperm.xlu2 %1275, %v591_v52   ;;  %1277 = vset.pattern.permute.xlu0 %v1294_v53 }
  0xcf   : > { %566 = vst [vmem:[#allocation2 + $0x8] sm:$0xff] %v551_v24 }
  0xd3   : > { %v457_v26 = vpop.permute.xlu1 %456 }
  0xd4   : > { %v1477_v27 = vld [vmem:[#allocation2 + $0x20] sm:$0xff]  ;;  %v462_v28 = vsel %vm460_vm6, %v455_v20, %v457_v26  ;;  %v463_v29 = vsel %vm460_vm6, %v457_v26, %v459_v56  ;;  %v514_v30 = vpop.permute.xlu0 %513 }
  0xd5   : > { %v554_v31 = vmax.f32 %v1477_v27, 0.0  ;;  %468 = vst [vmem:[#allocation2 + $0x10] sm:$0xf] %v462_v28 }
  0xd6   : > { %469 = vst [vmem:[#allocation2 + $0x38] sm:$0xf] %v463_v29 }
  0xd7   : > { %569 = vst [vmem:[#allocation2 + $0x20] sm:$0xff] %v554_v31 }
  0xdb   : > { %v306_v32 = vpop.permute.xlu1 %305 }
  0xdc   : > { %v1484_v33 = vld [vmem:[#allocation2 + $0x10] sm:$0xff]  ;;  %v314_v34 = vsel %vm313_vm0, %v306_v32, %v1426_v42  ;;  %v516_v35 = vpop.permute.xlu0 %515 }
  0xdd   : > { %v1488_v36 = vld [vmem:[#allocation2 + $0x38] sm:$0xff]  ;;  %v555_v37 = vmax.f32 %v1484_v33, 0.0  ;;  %320 = vst [vmem:[#allocation2 + $0x30] sm:$0xf0] %v314_v34  ;;  %v521_v39 = vsel %vm519_vm7, %v514_v30, %v516_v35 }
  0xde   : > { %v556_v41 = vmax.f32 %v1488_v36, 0.0  ;;  %527 = vst [vmem:[#allocation2 + $0x70] sm:$0xf] %v521_v39 }
  0xdf   : > { %570 = vst [vmem:[#allocation2 + $0x10] sm:$0xff] %v555_v37 }
  0xe0   : > { %571 = vst [vmem:[#allocation2 + $0x38] sm:$0xff] %v556_v41 }
  0xe3   : > { %v518_v43 = vpop.permute.xlu1 %517 }
  0xe4   : > { %v530_v44 = vld [vmem:[#allocation2 + $0x30] sm:$0xff]  ;;  %v522_v45 = vsel %vm519_vm7, %v516_v35, %v518_v43  ;;  %v512_v46 = vpop.permute.xlu0 %511 }
  0xe5   : > { %v545_v48 = vmax.f32 %v530_v44, 0.0  ;;  %v1494_v42 = vld [vmem:[#allocation2 + $0x70] sm:$0xf]  ;;  %528 = vst [vmem:[#allocation2 + $0x28] sm:$0xf] %v522_v45  ;;  %v520_v50 = vsel %vm519_vm7, %v512_v46, %v514_v30 }
  0xe6   : > { %v558_v51 = vmax.f32 %v1494_v42, 0.0  ;;  %526 = vst [vmem:[#allocation2 + $0x60] sm:$0xf] %v520_v50 }
  0xe7   : > { %560 = vst [vmem:[#allocation2 + $0x30] sm:$0xff] %v545_v48 }
  0xe8   : > { %573 = vst [vmem:[#allocation2 + $0x70] sm:$0xf] %v558_v51 }
  0xeb   : > { %v312_v54 = vpop.permute.xlu1 %311 }
  0xec   : > { %v1501_v55 = vld [vmem:[#allocation2 + $0x28] sm:$0xf]  ;;  %v316_v56 = vsel %vm313_vm0, %v1420_v38, %v312_v54  ;;  %v371_v58 = vpop.permute.xlu0 %370 }
  0xed   : > { %v559_v59 = vmax.f32 %v1501_v55, 0.0  ;;  %v542_v61 = vld [vmem:[#allocation2 + $0x60] sm:$0xf]  ;;  %322 = vst [vmem:[#allocation2 + $0x58] sm:$0xf0] %v316_v56  ;;  %v375_v62 = vsel %vm372_vm3, %v1424_v40, %v371_v58 }
  0xee   : > { %v557_v0 = vmax.f32 %v542_v61, 0.0  ;;  %381 = vst [vmem:[#allocation2 + $0x68] sm:$0xf0] %v375_v62 }
  0xef   : > { %574 = vst [vmem:[#allocation2 + $0x28] sm:$0xf] %v559_v59  ;;  %v589_v1 = vld [vmem:[#allocation2 + $0x70] sm:$0xf] }
  0xf0   : > { %572 = vst [vmem:[#allocation2 + $0x60] sm:$0xf] %v557_v0  ;;  %1231 = vmatpush.msk.msra.mxu1 %vm601_vm8, %v589_v1 }
  0xf2   : > { %643 = vmatpush.msra.mxu1 %v555_v37 }
  0xf4   : > { %v1509_v2 = vld [vmem:[#allocation2 + $0x58] sm:$0xff]  ;;  %644 = vmatpush.msra.mxu1 %v552_v16  ;;  %v676_v16 = vperm.slane %v674_v8, 0 }
  0xf5   : > { %v547_v38 = vmax.f32 %v1509_v2, 0.0  ;;  %v1514_v4 = vld [vmem:[#allocation2 + $0x68] sm:$0xff] }
  0xf6   : > { %v550_v40 = vmax.f32 %v1514_v4, 0.0  ;;  %645 = vmatpush.msra.mxu1 %v549_v60  ;;  %v590_v5 = vld [vmem:[#allocation2 + $0x28] sm:$0xf] }
  0xf7   : > { %562 = vst [vmem:[#allocation2 + $0x58] sm:$0xff] %v547_v38  ;;  %v588_v7 = vld [vmem:[#allocation2 + $0x60] sm:$0xf]  ;;  %1233 = vmatpush.msk.msra.mxu2 %vm601_vm8, %v590_v5 }
  0xf8   : > { %565 = vst [vmem:[#allocation2 + $0x68] sm:$0xff] %v550_v40  ;;  %1229 = vmatpush.msk.msra.mxu0 %vm601_vm8, %v588_v7  ;;  %646 = vmatpush.msra.mxu1 %v546_v49  ;;  %v1295_v49 = vmov 0.0  }
  0xf9   : > { %663 = vmatpush.msra.mxu2 %v556_v41  ;;  %1232 = vmatmul.msk.f32.vlgmr.msra.gmra.mxu1 %vm597_vm9, %v575_v6  ;;  %685 = vst [vmem:[#allocation3] sm:$0xff] %v1295_v49 }
  0xfa   : > { %623 = vmatpush.msra.mxu0 %v554_v31  ;;  %686 = vst [vmem:[#allocation3 + $0x8] sm:$0xff] %v1295_v49 }
  0xfb   : > { %664 = vmatpush.msra.mxu2 %v553_v18 }
  0xfc   : > { %624 = vmatpush.msra.mxu0 %v551_v24 }
  0xfd   : > { %665 = vmatpush.msra.mxu2 %v550_v40 }
  0xfe   : > { %625 = vmatpush.msra.mxu0 %v548_v3 }
  0xff   : > { %666 = vmatpush.msra.mxu2 %v547_v38 }
 0x100   : > { %626 = vmatpush.msra.mxu0 %v545_v48  ;;  %1234 = vmatmul.msk.f32.vlgmr.msra.gmra.mxu2 %vm597_vm9, %v575_v6 }
 0x101   : > { %1230 = vmatmul.msk.f32.vlgmr.msra.gmra.mxu0 %vm597_vm9, %v575_v6  ;;  %1241 = vmatpush.msk.msrb.mxu2 %vm601_vm8, %v542_v61 }
 0x103   : > { %1067 = vmatpush.msrb.mxu2 %v1477_v27 }
 0x105   : > { %1068 = vmatpush.msrb.mxu2 %v1470_v21 }
 0x107   : > { %1069 = vmatpush.msrb.mxu2 %v1447_v63 }
 0x109   : > { %1070 = vmatpush.msrb.mxu2 %v530_v44 }
 0x128   : > { %v595_v60 = vpop.permute.xlu2 %594 }
 0x176   : > { %v648_v3 = vpop.f32.mrf.mxu1 }
 0x177   : > { %v649_v9 = vadd.f32 %v648_v3, %v595_v60 }
 0x179   : > { %v672_v10 = vmax.f32 %v649_v9, 0.0 }
 0x17b   : > { %v683_v13 = vmul.f32 %v677_v11, %v672_v10 }
 0x17d   : > { %v690_v18 = vrot.slane %v683_v13, 4 }
 0x17e   : > { %v628_v14 = vpop.f32.mrf.mxu0 }
 0x17f   : > { %v629_v15 = vadd.f32 %v628_v14, %v595_v60 }
 0x181   : > { %v671_v19 = vmax.f32 %v629_v15, 0.0 }
 0x183   : > { %v682_v63 = vmul.f32 %v676_v16, %v671_v19  ;;  %v668_v20 = vpop.f32.mrf.mxu2 }
 0x184   : > { %v669_v21 = vadd.f32 %v668_v20, %v595_v60 }
 0x185   : > { %v691_v23 = vsel %vm601_vm8, %v682_v63, %v690_v18 }
 0x186   : > { %v673_v24 = vmax.f32 %v669_v21, 0.0  ;;  %692 = vrot.lane.b32.xlu0 %v691_v23, %s1296_s21 }
 0x188   : > { %v684_v25 = vmul.f32 %v678_v22, %v673_v24 }
 0x18a   : > { %694 = vrot.lane.b32.xlu1 %v684_v25, %s1296_s21 }
 0x1f8   : > { %v693_v26 = vpop.permute.xlu0 %692 }
 0x1f9   : > { %v696_v27 = vrot.slane %v693_v26, 4 }
 0x1fb   : > { %v699_v28 = vsel %vm698_vm12, %v696_v27, %v693_v26 }
 0x1fc   : > { %707 = vst.msk [vmem:[#allocation3] sm:$0xff] %vm706_vm13, %v699_v28  ;;  %v695_v29 = vpop.permute.xlu1 %694 }
 0x1fd   : > { %v697_v30 = vrot.slane %v695_v29, 4 }
 0x1ff   : > { %v700_v31 = vsel %vm601_vm8, %v696_v27, %v697_v30 }
 0x200   : > { %v701_v32 = vsel %vm698_vm12, %v700_v31, %v695_v29 }
 0x201   : > { %710 = vst.msk [vmem:[#allocation3 + $0x8] sm:$0xff] %vm709_vm15, %v701_v32 }
 0x203   : > { %v1547_v34 = vld [vmem:[#allocation3] sm:$0xff] }
 0x204   : > { %715 = vst [vmem:[#allocation1] ss:$2 sm:$0xff] %v1547_v34 }
 0x208   : > { %v712_v35 = vld [vmem:[#allocation3 + $0x8] sm:$0xf] }
 0x209   : > { %717 = vst [vmem:[#allocation1 + $0x10] ss:$2 sm:$0xff] %v712_v35  ;;  %v728_v41 = vld [vmem:[#allocation3 + $0x8] sm:$0xff] }
 0x20b   : > { %v718_v37 = vld.sshfl [vmem:[#allocation1] sm:$0xff pattern:$0x75316420]  ;;  %v719_v39 = vld.sshfl [vmem:[#allocation1 + $0x8] sm:$0xff pattern:$0x75316420] }
 0x20c   : > { %732 = vst [vmem:[#allocation1 + $0x1] ss:$2 sm:$0xff] %v1547_v34 }
 0x20d   : > { %724 = vst [vmem:[#allocation2 + $0x30] sm:$0xf] %v718_v37 }
 0x20e   : > { %725 = vst [vmem:[#allocation2] sm:$0xf] %v719_v39 }
 0x210   : > { %v720_v43 = vld.sshfl [vmem:[#allocation1 + $0x10] sm:$0xff pattern:$0x75316420] }
 0x211   : > { %734 = vst [vmem:[#allocation1 + $0x11] ss:$2 sm:$0xff] %v728_v41 }
 0x212   : > { %726 = vst [vmem:[#allocation2 + $0x58] sm:$0xf] %v720_v43 }
 0x213   : > { %v736_v44 = vld.sshfl [vmem:[#allocation1 + $0x8] sm:$0xff pattern:$0x75316420]  ;;  %v735_v45 = vld.sshfl [vmem:[#allocation1] sm:$0xff pattern:$0x75316420] }
 0x214   : > { %741 = vrot.lane.b32.xlu2 %v736_v44, %s1286_s30  ;;  %739 = vrot.lane.b32.xlu1 %v735_v45, %s1286_s30  ;;  %760 = vst [vmem:[#allocation1] ss:$2 sm:$0xff] %v1547_v34 }
 0x218   : > { %v1554_v46 = vld.sshfl [vmem:[#allocation1 + $0x10] sm:$0xff pattern:$0x75316420]  ;;  %v1556_v48 = vld.sshfl [vmem:[#allocation1 + $0x18] sm:$0xff pattern:$0x75316420] }
 0x219   : > { %762 = vst [vmem:[#allocation1 + $0x10] ss:$2 sm:$0xff] %v728_v41 }
 0x21b   : > { %v764_v50 = vld.sshfl [vmem:[#allocation1 + $0x8] sm:$0xff pattern:$0x75316420]  ;;  %v763_v51 = vld.sshfl [vmem:[#allocation1] sm:$0xff pattern:$0x75316420] }
 0x21c   : > { %769 = vrot.lane.b32.xlu1 %v764_v50, %s1287_s8  ;;  %767 = vrot.lane.b32.xlu0 %v763_v51, %s1287_s8  ;;  %789 = vst [vmem:[#allocation1 + $0x1] ss:$2 sm:$0xff] %v1547_v34 }
 0x220   : > { %v765_v52 = vld.sshfl [vmem:[#allocation1 + $0x10] sm:$0xff pattern:$0x75316420]  ;;  %v766_v53 = vld.sshfl [vmem:[#allocation1 + $0x18] sm:$0xff pattern:$0x75316420] }
 0x221   : > { %771 = vrot.lane.b32.xlu2 %v765_v52, %s1287_s8  ;;  %791 = vst [vmem:[#allocation1 + $0x11] ss:$2 sm:$0xff] %v728_v41 }
 0x223   : > { %v793_v54 = vld.sshfl [vmem:[#allocation1 + $0x8] sm:$0xff pattern:$0x75316420]  ;;  %v792_v56 = vld.sshfl [vmem:[#allocation1] sm:$0xff pattern:$0x75316420] }
 0x224   : > { %798 = vrot.lane.b32.xlu0 %v793_v54, %s1288_s9  ;;  %817 = vst [vmem:[#allocation1] ss:$2 sm:$0xff] %v1547_v34 }
 0x228   : > { %v794_v58 = vld.sshfl [vmem:[#allocation1 + $0x10] sm:$0xff pattern:$0x75316420]  ;;  %v795_v59 = vld.sshfl [vmem:[#allocation1 + $0x18] sm:$0xff pattern:$0x75316420] }
 0x229   : > { %819 = vst [vmem:[#allocation1 + $0x10] ss:$2 sm:$0xff] %v728_v41  ;;  %796 = vrot.lane.b32.xlu2 %v792_v56, %s1288_s9 }
 0x22b   : > { %v821_v61 = vld.sshfl [vmem:[#allocation1 + $0x8] sm:$0xff pattern:$0x75316420]  ;;  %v820_v62 = vld.sshfl [vmem:[#allocation1] sm:$0xff pattern:$0x75316420] }
 0x22c   : > { %800 = vrot.lane.b32.xlu0 %v794_v58, %s1288_s9  ;;  %846 = vst [vmem:[#allocation1 + $0x1] ss:$2 sm:$0xff] %v1547_v34  ;;  %v1616_v58 = vld [vmem:[%s1682_s1] sm:$0xff] }
 0x22d   : > { %1242 = vmatmul.msk.f32.vlgmr.msrb.gmra.mxu2 %vm597_vm9, %v1616_v58 }
 0x230   : > { %v822_v0 = vld.sshfl [vmem:[#allocation1 + $0x10] sm:$0xff pattern:$0x75316420]  ;;  %v823_v1 = vld.sshfl [vmem:[#allocation1 + $0x18] sm:$0xff pattern:$0x75316420] }
 0x231   : > { %824 = vrot.lane.b32.xlu2 %v820_v62, %s1289_s10  ;;  %848 = vst [vmem:[#allocation1 + $0x11] ss:$2 sm:$0xff] %v728_v41 }
 0x233   : > { %v849_v38 = vld.sshfl [vmem:[#allocation1] sm:$0xff pattern:$0x75316420]  ;;  %v850_v40 = vld.sshfl [vmem:[#allocation1 + $0x8] sm:$0xff pattern:$0x75316420] }
 0x234   : > { %826 = vrot.lane.b32.xlu0 %v821_v61, %s1289_s10  ;;  %853 = vrot.lane.b32.xlu1 %v849_v38, %s1290_s11  ;;  %874 = vst [vmem:[#allocation1] ss:$2 sm:$0xff] %v1547_v34 }
 0x238   : > { %v851_v5 = vld.sshfl [vmem:[#allocation1 + $0x10] sm:$0xff pattern:$0x75316420]  ;;  %v852_v6 = vld.sshfl [vmem:[#allocation1 + $0x18] sm:$0xff pattern:$0x75316420] }
 0x239   : > { %855 = vrot.lane.b32.xlu2 %v850_v40, %s1290_s11  ;;  %876 = vst [vmem:[#allocation1 + $0x10] ss:$2 sm:$0xff] %v728_v41 }
 0x23b   : > { %v878_v7 = vld.sshfl [vmem:[#allocation1 + $0x8] sm:$0xff pattern:$0x75316420]  ;;  %v877_v49 = vld.sshfl [vmem:[#allocation1] sm:$0xff pattern:$0x75316420] }
 0x23c   : > { %828 = vrot.lane.b32.xlu0 %v822_v0, %s1289_s10  ;;  %857 = vrot.lane.b32.xlu1 %v851_v5, %s1290_s11  ;;  %903 = vst [vmem:[#allocation1 + $0x1] ss:$2 sm:$0xff] %v1547_v34 }
 0x240   : > { %v879_v60 = vld.sshfl [vmem:[#allocation1 + $0x10] sm:$0xff pattern:$0x75316420]  ;;  %v880_v3 = vld.sshfl [vmem:[#allocation1 + $0x18] sm:$0xff pattern:$0x75316420] }
 0x241   : > { %883 = vrot.lane.b32.xlu2 %v878_v7, %s1291_s12  ;;  %905 = vst [vmem:[#allocation1 + $0x11] ss:$2 sm:$0xff] %v728_v41 }
 0x243   : > { %v906_v8 = vld.sshfl [vmem:[#allocation1] sm:$0xff pattern:$0x75316420]  ;;  %v907_v9 = vld.sshfl [vmem:[#allocation1 + $0x8] sm:$0xff pattern:$0x75316420] }
 0x244   : > { %881 = vrot.lane.b32.xlu1 %v877_v49, %s1291_s12  ;;  %910 = vrot.lane.b32.xlu0 %v906_v8, %s1292_s13  ;;  %931 = vst [vmem:[#allocation1] ss:$2 sm:$0xff] %v1547_v34 }
 0x248   : > { %v908_v10 = vld.sshfl [vmem:[#allocation1 + $0x10] sm:$0xff pattern:$0x75316420]  ;;  %v909_v11 = vld.sshfl [vmem:[#allocation1 + $0x18] sm:$0xff pattern:$0x75316420] }
 0x249   : > { %914 = vrot.lane.b32.xlu2 %v908_v10, %s1292_s13  ;;  %933 = vst [vmem:[#allocation1 + $0x10] ss:$2 sm:$0xff] %v728_v41 }
 0x24b   : > { %v934_v13 = vld.sshfl [vmem:[#allocation1] sm:$0xff pattern:$0x75316420]  ;;  %v935_v14 = vld.sshfl [vmem:[#allocation1 + $0x8] sm:$0xff pattern:$0x75316420] }
 0x24c   : > { %885 = vrot.lane.b32.xlu1 %v879_v60, %s1291_s12  ;;  %887 = vrot.lane.b32.xlu0 %v880_v3, %s1291_s12  ;;  %v1115_v60 = vld [vmem:[%s1685_s4] sm:$0xff]  ;;  %s1297_s12 = smov 88  }
 0x250   : > { %v936_v15 = vld.sshfl [vmem:[#allocation1 + $0x10] sm:$0xff pattern:$0x75316420]  ;;  %v937_v16 = vld.sshfl [vmem:[#allocation1 + $0x18] sm:$0xff pattern:$0x75316420] }
 0x251   : > { %938 = vrot.lane.b32.xlu2 %v934_v13, %s1293_s14 }
 0x254   : > { %912 = vrot.lane.b32.xlu1 %v907_v9, %s1292_s13  ;;  %940 = vrot.lane.b32.xlu0 %v935_v14, %s1293_s14 }
 0x259   : > { %830 = vrot.lane.b32.xlu2 %v823_v1, %s1289_s10 }
 0x25c   : > { %743 = vrot.lane.b32.xlu1 %v1554_v46, %s1286_s30  ;;  %942 = vrot.lane.b32.xlu0 %v936_v15, %s1293_s14 }
 0x261   : > { %944 = vrot.lane.b32.xlu2 %v937_v16, %s1293_s14  ;;  %s1300_s14 = smov 28  }
 0x264   : > { %916 = vrot.lane.b32.xlu1 %v909_v11, %s1292_s13  ;;  %859 = vrot.lane.b32.xlu0 %v852_v6, %s1290_s11  ;;  %s1298_s13 = smov 68  }
 0x269   : > { %802 = vrot.lane.b32.xlu2 %v795_v59, %s1288_s9 }
 0x26c   : > { %773 = vrot.lane.b32.xlu1 %v766_v53, %s1287_s8  ;;  %745 = vrot.lane.b32.xlu0 %v1556_v48, %s1286_s30  ;;  %s1228_s30 = sshll.u32 %s1690_s25, 3  ;;  %s1299_s25 = smov 8  }
 0x26d   : > { %s1667_s10 = scalar_lea.vmem %s1688_s7, %s1228_s30 }
 0x26e   : > { %v1596_v18 = vpop.permute.xlu2 %741 }
 0x274   : > { %1118 = vperm.xlu1 %1276, %v1115_v60  }
 0x27b   : > { %v1598_v19 = vpop.permute.xlu2 %771 }
 0x283   : > { %v797_v63 = vpop.permute.xlu2 %796 }
 0x286   : > { %v740_v20 = vpop.permute.xlu1 %739 }
 0x287   : > { %v747_v21 = vsel %vm313_vm0, %v740_v20, %v1596_v18 }
 0x288   : > { %753 = vst [vmem:[#allocation2 + $0x30] sm:$0xf0] %v747_v21 }
 0x28b   : > { %v825_v22 = vpop.permute.xlu2 %824 }
 0x28e   : > { %v770_v23 = vpop.permute.xlu1 %769  ;;  %v768_v24 = vpop.permute.xlu0 %767 }
 0x28f   : > { %v776_v25 = vsel %vm342_vm1, %v770_v23, %v1598_v19  ;;  %v775_v26 = vsel %vm342_vm1, %v768_v24, %v770_v23  ;;  %v955_v23 = vld [vmem:[%s1684_s3] sm:$0xff]  ;;  %v956_v24 = vld [vmem:[#allocation2 + $0x30] sm:$0xff] }
 0x290   : > { %782 = vst [vmem:[#allocation2 + $0x50] sm:$0xf] %v776_v25 }
 0x291   : > { %781 = vst [vmem:[#allocation2 + $0x18] sm:$0xf] %v775_v26 }
 0x293   : > { %v856_v27 = vpop.permute.xlu2 %855 }
 0x296   : > { %v799_v28 = vpop.permute.xlu0 %798 }
 0x297   : > { %v804_v29 = vsel %vm372_vm3, %v797_v63, %v799_v28 }
 0x298   : > { %810 = vst [vmem:[#allocation2 + $0x18] sm:$0xf0] %v804_v29 }
 0x29b   : > { %v884_v30 = vpop.permute.xlu2 %883 }
 0x29e   : > { %v801_v31 = vpop.permute.xlu0 %800 }
 0x29f   : > { %v805_v32 = vsel %vm372_vm3, %v799_v28, %v801_v31  ;;  %v959_v21 = vld [vmem:[#allocation2 + $0x18] sm:$0xff] }
 0x2a0   : > { %811 = vst [vmem:[#allocation2 + $0x50] sm:$0xf0] %v805_v32 }
 0x2a3   : > { %v915_v34 = vpop.permute.xlu2 %914 }
 0x2a6   : > { %v827_v35 = vpop.permute.xlu0 %826  ;;  %v854_v37 = vpop.permute.xlu1 %853 }
 0x2a7   : > { %v832_v39 = vsel %vm401_vm2, %v825_v22, %v827_v35  ;;  %v861_v41 = vsel %vm431_vm4, %v854_v37, %v856_v27  ;;  %v960_v29 = vld [vmem:[#allocation2 + $0x50] sm:$0xff] }
 0x2a8   : > { %838 = vst [vmem:[#allocation2 + $0x8] sm:$0xf] %v832_v39 }
 0x2a9   : > { %867 = vst [vmem:[#allocation2 + $0x8] sm:$0xf0] %v861_v41 }
 0x2ab   : > { %v939_v43 = vpop.permute.xlu2 %938 }
 0x2ae   : > { %v829_v44 = vpop.permute.xlu0 %828  ;;  %v858_v45 = vpop.permute.xlu1 %857 }
 0x2af   : > { %v833_v46 = vsel %vm401_vm2, %v827_v35, %v829_v44  ;;  %v862_v48 = vsel %vm431_vm4, %v856_v27, %v858_v45 }
 0x2b0   : > { %839 = vst [vmem:[#allocation2 + $0x48] sm:$0xf] %v833_v46  ;;  %v962_v15 = vld [vmem:[#allocation2 + $0x8] sm:$0xff] }
 0x2b1   : > { %868 = vst [vmem:[#allocation2 + $0x48] sm:$0xf0] %v862_v48 }
 0x2b3   : > { %v831_v50 = vpop.permute.xlu2 %830 }
 0x2b4   : > { %v834_v51 = vsel %vm401_vm2, %v829_v44, %v831_v50  ;;  %vm1135_vm2 = vcmask 392448  }
 0x2b5   : > { %840 = vst [vmem:[#allocation2 + $0x40] sm:$0xf] %v834_v51 }
 0x2b6   : > { %v882_v52 = vpop.permute.xlu1 %881  ;;  %v911_v53 = vpop.permute.xlu0 %910 }
 0x2b7   : > { %v889_v54 = vsel %vm460_vm6, %v882_v52, %v884_v30 }
 0x2b8   : > { %895 = vst [vmem:[#allocation2 + $0x20] sm:$0xf] %v889_v54  ;;  %v963_v27 = vld [vmem:[#allocation2 + $0x48] sm:$0xff] }
 0x2bb   : > { %v945_v56 = vpop.permute.xlu2 %944 }
 0x2be   : > { %v886_v59 = vpop.permute.xlu1 %885  ;;  %v888_v61 = vpop.permute.xlu0 %887 }
 0x2bf   : > { %v890_v62 = vsel %vm460_vm6, %v884_v30, %v886_v59  ;;  %v891_v0 = vsel %vm460_vm6, %v886_v59, %v888_v61  ;;  %vm1156_vm6 = vcmask 917248  }
 0x2c0   : > { %896 = vst [vmem:[#allocation2 + $0x10] sm:$0xf] %v890_v62 }
 0x2c1   : > { %897 = vst [vmem:[#allocation2 + $0x38] sm:$0xf] %v891_v0 }
 0x2c3   : > { %v803_v1 = vpop.permute.xlu2 %802 }
 0x2c4   : > { %v806_v38 = vsel %vm372_vm3, %v801_v31, %v803_v1  ;;  %vm1140_vm3 = vcmask 523648  }
 0x2c5   : > { %812 = vst [vmem:[#allocation2 + $0x68] sm:$0xf0] %v806_v38 }
 0x2c6   : > { %v913_v40 = vpop.permute.xlu1 %912  ;;  %v941_v5 = vpop.permute.xlu0 %940 }
 0x2c7   : > { %v918_v6 = vsel %vm490_vm5, %v911_v53, %v913_v40  ;;  %v919_v7 = vsel %vm490_vm5, %v913_v40, %v915_v34  ;;  %v946_v49 = vsel %vm519_vm7, %v939_v43, %v941_v5 }
 0x2c8   : > { %924 = vst [vmem:[#allocation2 + $0x20] sm:$0xf0] %v918_v6 }
 0x2c9   : > { %925 = vst [vmem:[#allocation2 + $0x10] sm:$0xf0] %v919_v7 }
 0x2ca   : > { %952 = vst [vmem:[#allocation2 + $0x60] sm:$0xf] %v946_v49 }
 0x2ce   : > { %v744_v3 = vpop.permute.xlu1 %743  ;;  %v943_v8 = vpop.permute.xlu0 %942 }
 0x2cf   : > { %v748_v9 = vsel %vm313_vm0, %v1596_v18, %v744_v3  ;;  %v947_v10 = vsel %vm519_vm7, %v941_v5, %v943_v8  ;;  %v948_v11 = vsel %vm519_vm7, %v943_v8, %v945_v56  ;;  %v965_v14 = vld [vmem:[#allocation2 + $0x20] sm:$0xff]  ;;  %vm1163_vm7 = vcmask 949248  }
 0x2d0   : > { %754 = vst [vmem:[#allocation2] sm:$0xf0] %v748_v9  ;;  %v966_v26 = vld [vmem:[#allocation2 + $0x10] sm:$0xff] }
 0x2d1   : > { %953 = vst [vmem:[#allocation2 + $0x70] sm:$0xf] %v947_v10  ;;  %v968_v13 = vld [vmem:[#allocation2 + $0x60] sm:$0xf] }
 0x2d2   : > { %954 = vst [vmem:[#allocation2 + $0x28] sm:$0xf] %v948_v11  ;;  %1235 = vmatpush.msk.msra.mxu3 %vm601_vm8, %v968_v13 }
 0x2d4   : > { %995 = vmatpush.msra.mxu3 %v965_v14 }
 0x2d6   : > { %996 = vmatpush.msra.mxu3 %v962_v15  ;;  %v917_v16 = vpop.permute.xlu1 %916  ;;  %v860_v63 = vpop.permute.xlu0 %859 }
 0x2d7   : > { %v920_v20 = vsel %vm490_vm5, %v915_v34, %v917_v16  ;;  %v863_v18 = vsel %vm431_vm4, %v858_v45, %v860_v63  ;;  %v957_v35 = vld [vmem:[#allocation2] sm:$0xff]  ;;  %vm1146_vm4 = vcmask 654848   ;;  %vm1151_vm5 = vcmask 786048  }
 0x2d8   : > { %926 = vst [vmem:[#allocation2 + $0x38] sm:$0xf0] %v920_v20  ;;  %997 = vmatpush.msra.mxu3 %v959_v21  ;;  %v969_v22 = vld [vmem:[#allocation2 + $0x70] sm:$0xf] }
 0x2d9   : > { %869 = vst [vmem:[#allocation2 + $0x40] sm:$0xf0] %v863_v18  ;;  %1237 = vmatpush.msk.msrb.mxu0 %vm601_vm8, %v969_v22  ;;  %v970_v25 = vld [vmem:[#allocation2 + $0x28] sm:$0xf] }
 0x2da   : > { %998 = vmatpush.msra.mxu3 %v956_v24  ;;  %1239 = vmatpush.msk.msrb.mxu1 %vm601_vm8, %v970_v25 }
 0x2db   : > { %1236 = vmatmul.msk.f32.vlgmr.msra.gmra.mxu3 %vm597_vm9, %v955_v23  ;;  %1015 = vmatpush.msrb.mxu0 %v966_v26 }
 0x2dc   : > { %1243 = vmatpush.msk.msrb.mxu3 %vm601_vm8, %v1494_v42 }
 0x2dd   : > { %1016 = vmatpush.msrb.mxu0 %v963_v27 }
 0x2de   : > { %1087 = vmatpush.msrb.mxu3 %v1484_v33  ;;  %v774_v28 = vpop.permute.xlu1 %773  ;;  %v746_v30 = vpop.permute.xlu0 %745 }
 0x2df   : > { %v777_v31 = vsel %vm342_vm1, %v1598_v19, %v774_v28  ;;  %1017 = vmatpush.msrb.mxu0 %v960_v29  ;;  %v749_v32 = vsel %vm313_vm0, %v744_v3, %v746_v30  ;;  %v967_v34 = vld [vmem:[#allocation2 + $0x38] sm:$0xff]  ;;  %vm1124_vm0 = vcmask 130048   ;;  %vm1130_vm1 = vcmask 261248  }
 0x2e0   : > { %1088 = vmatpush.msrb.mxu3 %v1457_v12  ;;  %783 = vst [vmem:[#allocation2 + $0x68] sm:$0xf] %v777_v31  ;;  %1035 = vmatpush.msrb.mxu1 %v967_v34  ;;  %v964_v33 = vld [vmem:[#allocation2 + $0x40] sm:$0xff] }
 0x2e1   : > { %755 = vst [vmem:[#allocation2 + $0x58] sm:$0xf0] %v749_v32  ;;  %1018 = vmatpush.msrb.mxu0 %v957_v35 }
 0x2e2   : > { %1089 = vmatpush.msrb.mxu3 %v1441_v57  ;;  %1036 = vmatpush.msrb.mxu1 %v964_v33 }
 0x2e3   : > { %1245 = vmatpush.msk.msra.mxu0 %vm601_vm8, %v1501_v55  ;;  %vm1166_vm8 = vcmask 1048448  }
 0x2e4   : > { %1238 = vmatmul.msk.f32.vlgmr.msrb.gmra.mxu0 %vm597_vm9, %v955_v23  ;;  %1090 = vmatpush.msrb.mxu3 %v1432_v47  ;;  %v1072_v47 = vpop.f32.mrf.mxu2 }
 0x2e5   : > { %1107 = vmatpush.msra.mxu0 %v1488_v36  ;;  %1244 = vmatmul.msk.f32.vlgmr.msrb.gmra.mxu3 %vm597_vm9, %v1616_v58 }
 0x2e6   : > { %v1119_v42 = vpop.permute.xlu1 %1118 }
 0x2e7   : > { %1108 = vmatpush.msra.mxu0 %v1462_v17  ;;  %v961_v12 = vld [vmem:[#allocation2 + $0x68] sm:$0xff] }
 0x2e8   : > { %1037 = vmatpush.msrb.mxu1 %v961_v12  ;;  %v958_v57 = vld [vmem:[#allocation2 + $0x58] sm:$0xff] }
 0x2e9   : > { %1109 = vmatpush.msra.mxu0 %v1514_v4 }
 0x2ea   : > { %1038 = vmatpush.msrb.mxu1 %v958_v57 }
 0x2eb   : > { %1110 = vmatpush.msra.mxu0 %v1509_v2  ;;  %1240 = vmatmul.msk.f32.vlgmr.msrb.gmra.mxu1 %vm597_vm9, %v955_v23 }
 0x2ec   : > { %1246 = vmatmul.msk.f32.vlgmr.msra.gmra.mxu0 %vm597_vm9, %v1616_v58 }
 0x35e   : > { %v1000_v36 = vpop.f32.mrf.mxu3 }
 0x35f   : > { %v1073_v55 = vadd.f32 %v1072_v47, %v1000_v36 }
 0x361   : > { %v1121_v17 = vadd.f32 %v1119_v42, %v1073_v55  ;;  %v1020_v2 = vpop.f32.mrf.mxu0 }
 0x363   : > { %1132 = vrot.lane.b32.xlu0 %v1121_v17, %s1297_s12  ;;  %1137 = vrot.lane.b32.xlu1 %v1121_v17, %s1298_s13  ;;  %1125 = vst.msk [vmem:[%s1667_s10] sm:$0xff] %vm1124_vm0, %v1121_v17 }
 0x364   : > { %1127 = vrot.lane.b32.xlu2 %v1121_v17, %s1290_s11 }
 0x368   : > { %v1092_v4 = vpop.f32.mrf.mxu3  ;;  %v1040_v39 = vpop.f32.mrf.mxu1 }
 0x369   : > { %v1093_v19 = vadd.f32 %v1092_v4, %v1020_v2  ;;  %v1112_v41 = vpop.f32.mrf.mxu0 }
 0x36a   : > { %v1113_v43 = vadd.f32 %v1112_v41, %v1040_v39 }
 0x36b   : > { %v1122_v37 = vadd.f32 %v1119_v42, %v1093_v19 }
 0x36c   : > { %v1123_v44 = vadd.f32 %v1119_v42, %v1113_v43 }
 0x36d   : > { %1153 = vrot.lane.b32.xlu1 %v1122_v37, %s1299_s25  ;;  %1148 = vrot.lane.b32.xlu0 %v1122_v37, %s1300_s14 }
 0x36e   : > { %1143 = vrot.lane.b32.xlu2 %v1122_v37, %s1301_s15 }
 0x375   : > { %1161 = vrot.lane.b32.xlu0 %v1123_v44, %s1302_s16 }
 0x376   : > { %1159 = vrot.lane.b32.xlu2 %v1122_v37, %s1302_s16 }
 0x3be   : > { %v1128_v45 = vpop.permute.xlu2 %1127 }
 0x3bf   : > { %1131 = vst.msk [vmem:[%s1667_s10] sm:$0xff] %vm1130_vm1, %v1128_v45 }
 0x3c8   : > { %v1144_v50 = vpop.permute.xlu2 %1143 }
 0x3d0   : > { %v1160_v53 = vpop.permute.xlu2 %1159 }
 0x3d5   : > { %v1133_v46 = vpop.permute.xlu0 %1132  ;;  %v1138_v48 = vpop.permute.xlu1 %1137 }
 0x3d6   : > { %1136 = vst.msk [vmem:[%s1667_s10] sm:$0xff] %vm1135_vm2, %v1133_v46 }
 0x3d7   : > { %1141 = vst.msk [vmem:[%s1667_s10] sm:$0xff] %vm1140_vm3, %v1138_v48 }
 0x3d8   : > { %1147 = vst.msk [vmem:[%s1667_s10] sm:$0xff] %vm1146_vm4, %v1144_v50 }
 0x3df   : > { %v1154_v51 = vpop.permute.xlu1 %1153  ;;  %v1149_v52 = vpop.permute.xlu0 %1148 }
 0x3e0   : > { %1152 = vst.msk [vmem:[%s1667_s10] sm:$0xff] %vm1151_vm5, %v1149_v52 }
 0x3e1   : > { %1157 = vst.msk [vmem:[%s1667_s10] sm:$0xff] %vm1156_vm6, %v1154_v51 }
 0x3e7   : > { %v1162_v54 = vpop.permute.xlu0 %1161 }
 0x3e8   : > { %v1164_v56 = vsel %vm1163_vm7, %v1160_v53, %v1162_v54 }
 0x3e9   : > { %1167 = vst.msk [vmem:[%s1667_s10] sm:$0xff] %vm1166_vm8, %v1164_v56 }
 0x3ea PF: > { %s17_s24 = sadd.s32 1, %s1284_s24  }
 0x3eb   : > { %p14_p4 = scmp.ge.s32.totalorder %s17_s24, 4  }
 0x3ed   :  { %16 = sbr.rel (!%p14_p4) target bundleno = 1 (0x1), region = 104 }

</bundles_post_ra>
